<compile_context>
chip_gen: v7x
topology: tpu7x:2x2x1
jax: 0.10.0
libtpu: 0.0.40
codegen_flags: <defaults>
</compile_context>

<pallas_src>
import functools

import jax
import jax.numpy as jnp
from jax import lax
from jax.experimental import pallas as pl
from jax.experimental.pallas import tpu as pltpu


# ---------------------------------------------------------------------------
# Fused fwd+bwd LSTM recurrence over the combined state.
#   wx_ref : VMEM scratch (T*Bp, 8H); row block s holds the precomputed input
#            projections + bias for fused step s (fwd consumes time s, bwd
#            consumes time T-1-s), gate columns interleaved as
#            [i_f i_r | f_f f_r | o_f o_r | g_f g_r].
#   w_hh   : (2H, 8H) bf16 block-diagonal combined recurrent weights.
#   store_fn(s, h): consumes the combined hidden (Bp, 2H) of fused step s.
# ---------------------------------------------------------------------------
def _fused_bidir_recurrence(T, Bp, H, wx_ref, w_hh, store_fn):
    H2, H4, H6 = 2 * H, 4 * H, 6 * H
    h = jnp.zeros((Bp, H2), jnp.float32)
    c = jnp.zeros((Bp, H2), jnp.float32)
    # Fully unrolled (T is small); per-step live set is tiny because the input
    # projections are loaded from VMEM scratch each step.
    for s in range(T):
        g = jnp.dot(h.astype(jnp.bfloat16), w_hh,
                    preferred_element_type=jnp.float32)
        g = g + wx_ref[pl.ds(s * Bp, Bp), :]
        sg = jax.nn.sigmoid(g[:, :H6])      # [i_f i_r | f_f f_r | o_f o_r]
        gg = jnp.tanh(g[:, H6:])            # [g_f g_r]
        c = sg[:, H2:H4] * c + sg[:, :H2] * gg
        h = sg[:, H4:H6] * jnp.tanh(c)
        store_fn(s, h)


# ---------------------------------------------------------------------------
# The single fused kernel.
# ---------------------------------------------------------------------------
def _seq_classifier_kernel(T, Bp, H,
                           x_ref, xrev_ref,
                           row0f_ref, row0r_ref, bias0_ref, whh0_ref,
                           a1_ref, bm1_ref, bias1_ref, whh1_ref,
                           wlin_ref, blin_ref,
                           out_ref,
                           wx0_ref, hc0_ref, wx1_ref, out1_ref):
    # ---- Layer 0 input projections (Din = 1): pure VPU broadcast multiply
    # over the whole (T*Bp, 8H) slab, staged in VMEM scratch.
    wx0_ref[...] = (x_ref[...] * row0f_ref[...]
                    + xrev_ref[...] * row0r_ref[...]
                    + bias0_ref[...])

    # ---- Layer 0 fused recurrence; combined hidden staged with full-width,
    # tile-aligned stores (no masking).
    whh0 = whh0_ref[...]

    def store0(s, h):
        hc0_ref[pl.ds(s * Bp, Bp), :] = h

    _fused_bidir_recurrence(T, Bp, H, wx0_ref, whh0, store0)

    # ---- Layer 1 input projections: batched across all T (two MXU passes).
    #   wx1[s] = hc0[s] @ A1 + hc0[T-1-s] @ B1 + bias1
    # A1/B1 are pre-packed so no per-time lane reassembly of [h_f|h_r] is
    # needed; the reversed-time combine is done with static tile-aligned adds.
    hc0 = hc0_ref[...].astype(jnp.bfloat16)                          # (T*Bp, 2H)
    pa = jnp.dot(hc0, a1_ref[...], preferred_element_type=jnp.float32)
    wx1_ref[...] = pa + bias1_ref[...]
    pb = jnp.dot(hc0, bm1_ref[...], preferred_element_type=jnp.float32)
    for s in range(T):
        blk = pl.ds(s * Bp, Bp)
        wx1_ref[blk, :] = wx1_ref[blk, :] + pb[(T - 1 - s) * Bp:(T - s) * Bp, :]

    # ---- Layer 1 fused recurrence; reassemble per-time outputs
    # out1[t] = [h_f(t) | h_r(t)] directly into VMEM scratch.
    whh1 = whh1_ref[...]

    def store1(s, h):
        out1_ref[pl.ds(s * Bp, Bp), pl.ds(0, H)] = h[:, :H]
        out1_ref[pl.ds((T - 1 - s) * Bp, Bp), pl.ds(H, H)] = h[:, H:]

    _fused_bidir_recurrence(T, Bp, H, wx1_ref, whh1, store1)

    # ---- Head: Linear(2H -> 1) + Sigmoid, batched over all T*Bp rows:
    # one matmul, one sigmoid, ONE store.
    pre = jnp.dot(out1_ref[...], wlin_ref[...],
                  preferred_element_type=jnp.float32) + blin_ref[...]
    out_ref[...] = jax.nn.sigmoid(pre)


# ---------------------------------------------------------------------------
# Host-side weight packing into the fused combined-gate layout.
# Per-direction weights use gate order [i, f, o, g].
# ---------------------------------------------------------------------------
def pack_params(params, w_lin, b_lin, H):
    def place(w, direction):
        # (Din, 4H) -> (Din, 8H): gate block g of this direction goes to
        # columns [(2g+direction)*H : (2g+direction+1)*H); rest zero.
        d_in = w.shape[0]
        out = jnp.zeros((d_in, 8 * H), jnp.float32)
        for g in range(4):
            col = (2 * g + direction) * H
            out = out.at[:, col:col + H].set(w[:, g * H:(g + 1) * H])
        return out

    def combine_hh(whf, whr):
        # Block-diagonal: h_f rows drive fwd gate columns, h_r rows drive bwd.
        return jnp.concatenate([place(whf, 0), place(whr, 1)], axis=0)  # (2H,8H)

    wihf0, whhf0, bf0 = params[(0, 0)]
    wihr0, whhr0, br0 = params[(0, 1)]
    wihf1, whhf1, bf1 = params[(1, 0)]
    wihr1, whhr1, br1 = params[(1, 1)]

    row0f = place(wihf0, 0)                       # (1, 8H)
    row0r = place(wihr0, 1)                       # (1, 8H)
    bias0 = place(bf0, 0) + place(br0, 1)         # (1, 8H)
    whh0 = combine_hh(whhf0, whhr0).astype(jnp.bfloat16)

    w1f = place(wihf1, 0)                         # (2H, 8H)
    w1r = place(wihr1, 1)                         # (2H, 8H)
    # Layer 1 consumes the fused-step layer-0 state hc0[s] = [h_f(s)|h_r(T-1-s)]:
    #   wx1[s] = hc0[s] @ A1 + hc0[T-1-s] @ B1 + bias1
    a1 = jnp.concatenate([w1f[:H, :], w1r[H:, :]], axis=0).astype(jnp.bfloat16)
    bm1 = jnp.concatenate([w1r[:H, :], w1f[H:, :]], axis=0).astype(jnp.bfloat16)
    bias1 = place(bf1, 0) + place(br1, 1)
    whh1 = combine_hh(whhf1, whhr1).astype(jnp.bfloat16)

    return (row0f, row0r, bias0, whh0, a1, bm1, bias1, whh1,
            w_lin.astype(jnp.float32), b_lin.astype(jnp.float32))


# ---------------------------------------------------------------------------
# Wrapper: pad batch to a whole sublane tile, stack time into rows, run the
# fused kernel, slice the padding back off.
# ---------------------------------------------------------------------------
def sequence_classifier_forward(x, packed, hidden_size):
    T, B, _ = x.shape
    H = hidden_size
    Bp = ((B + 7) // 8) * 8                       # batch padded to sublane tile
    x_pad = jnp.zeros((T, Bp, 1), jnp.float32).at[:, :B, :].set(x)
    x_stk = x_pad.reshape(T * Bp, 1)
    xrev_stk = jnp.flip(x_pad, axis=0).reshape(T * Bp, 1)

    kernel = functools.partial(_seq_classifier_kernel, T, Bp, H)
    out = pl.pallas_call(
        kernel,
        out_shape=jax.ShapeDtypeStruct((T * Bp, 1), jnp.float32),
        in_specs=[pl.BlockSpec(memory_space=pltpu.MemorySpace.VMEM)] * 12,
        out_specs=pl.BlockSpec(memory_space=pltpu.MemorySpace.VMEM),
        scratch_shapes=[
            pltpu.VMEM((T * Bp, 8 * H), jnp.float32),   # wx0  (layer-0 projections)
            pltpu.VMEM((T * Bp, 2 * H), jnp.float32),   # hcomb0 (fused layer-0 state)
            pltpu.VMEM((T * Bp, 8 * H), jnp.float32),   # wx1  (layer-1 projections)
            pltpu.VMEM((T * Bp, 2 * H), jnp.float32),   # out1 (per-time [h_f|h_r])
        ],
        # TODO(synk): if batch grows, add a grid over batch tiles with
        # dimension_semantics=("parallel",) so blocks pipeline / shard across
        # TensorCores; at B=4 a single invocation is the right choice.
    )(x_stk, xrev_stk, *packed)
    return out.reshape(T, Bp, 1)[:, :B, :]


# ---------------------------------------------------------------------------
# Parameter init (deterministic, PyTorch-style uniform(-1/sqrt(H), 1/sqrt(H))),
# per-direction weights in gate order [i, f, o, g].
# ---------------------------------------------------------------------------
def init_params(key, hidden_size):
    H = hidden_size
    k = 1.0 / float(jnp.sqrt(jnp.float32(H)))
    layer_in = [1, 2 * H]
    keys = list(jax.random.split(key, 18))
    ki = iter(keys)
    params = {}
    for layer in range(2):
        for direction in range(2):
            d_in = layer_in[layer]
            w_ih = jax.random.uniform(next(ki), (d_in, 4 * H), minval=-k, maxval=k,
                                      dtype=jnp.float32)
            w_hh = jax.random.uniform(next(ki), (H, 4 * H), minval=-k, maxval=k,
                                      dtype=jnp.float32)
            b_ih = jax.random.uniform(next(ki), (1, 4 * H), minval=-k, maxval=k,
                                      dtype=jnp.float32)
            b_hh = jax.random.uniform(next(ki), (1, 4 * H), minval=-k, maxval=k,
                                      dtype=jnp.float32)
            params[(layer, direction)] = (w_ih, w_hh, b_ih + b_hh)
    kl = 1.0 / float(jnp.sqrt(jnp.float32(2 * H)))
    w_lin = jax.random.uniform(next(ki), (2 * H, 1), minval=-kl, maxval=kl,
                               dtype=jnp.float32)
    b_lin = jax.random.uniform(next(ki), (1, 1), minval=-kl, maxval=kl,
                               dtype=jnp.float32)
    return params, w_lin, b_lin


# ---------------------------------------------------------------------------
# Pure-JAX f32 reference (lax.scan) for the correctness check.
# Same per-direction gate packing [i, f, o, g] as the kernel.
# ---------------------------------------------------------------------------
def _ref_lstm_dir(x, w_ih, w_hh, b):
    _, B, _ = x.shape
    H = w_hh.shape[0]

    def step(carry, xt):
        h, c = carry
        gates = xt @ w_ih + h @ w_hh + b
        i = jax.nn.sigmoid(gates[:, :H])
        f = jax.nn.sigmoid(gates[:, H:2 * H])
        o = jax.nn.sigmoid(gates[:, 2 * H:3 * H])
        g = jnp.tanh(gates[:, 3 * H:])
        c = f * c + i * g
        h = o * jnp.tanh(c)
        return (h, c), h

    (_, _), hs = lax.scan(step,
                          (jnp.zeros((B, H), jnp.float32),
                           jnp.zeros((B, H), jnp.float32)), x)
    return hs


def _ref_forward(x, params, w_lin, b_lin):
    layer_input = x
    for layer in range(2):
        w_ih_f, w_hh_f, b_f = params[(layer, 0)]
        w_ih_r, w_hh_r, b_r = params[(layer, 1)]
        h_fwd = _ref_lstm_dir(layer_input, w_ih_f, w_hh_f, b_f)
        h_bwd = jnp.flip(_ref_lstm_dir(jnp.flip(layer_input, 0), w_ih_r, w_hh_r, b_r), 0)
        layer_input = jnp.concatenate([h_fwd, h_bwd], axis=-1)
    return jax.nn.sigmoid(layer_input @ w_lin + b_lin)


if __name__ == "__main__":
    seq_len, batch, hidden = 8, 4, 32
    key = jax.random.PRNGKey(0)
    k_x, k_p = jax.random.split(key)
    x = jax.random.normal(k_x, (seq_len, batch, 1), dtype=jnp.float32)
    params, w_lin, b_lin = init_params(k_p, hidden)
    packed = pack_params(params, w_lin, b_lin, hidden)

    preds = sequence_classifier_forward(x, packed, hidden)
    preds = jax.block_until_ready(preds)
    assert preds.shape == (seq_len, batch, 1)

    ref = jax.block_until_ready(_ref_forward(x, params, w_lin, b_lin))
    # Tolerance loosened vs. the pure-f32 version because MXU operands
    # (W_hh, layer-1 W_ih, h) are bf16 in the kernel (reference stays f32).
    assert jnp.allclose(preds, ref, atol=2e-2, rtol=2e-2)

    print("KERNEL_OK")
</pallas_src>

<mosaic_0001>
module attributes {stable_mosaic.version = 11 : i64} {
  func.func @_seq_classifier_kernel(%arg0: memref<64x1xf32, #tpu.memory_space<vmem>>, %arg1: memref<64x1xf32, #tpu.memory_space<vmem>>, %arg2: memref<1x256xf32, #tpu.memory_space<vmem>>, %arg3: memref<1x256xf32, #tpu.memory_space<vmem>>, %arg4: memref<1x256xf32, #tpu.memory_space<vmem>>, %arg5: memref<64x256xbf16, #tpu.memory_space<vmem>>, %arg6: memref<64x256xbf16, #tpu.memory_space<vmem>>, %arg7: memref<64x256xbf16, #tpu.memory_space<vmem>>, %arg8: memref<1x256xf32, #tpu.memory_space<vmem>>, %arg9: memref<64x256xbf16, #tpu.memory_space<vmem>>, %arg10: memref<64x1xf32, #tpu.memory_space<vmem>>, %arg11: memref<1x1xf32, #tpu.memory_space<vmem>>, %arg12: memref<64x1xf32, #tpu.memory_space<vmem>>, %arg13: memref<64x256xf32, #tpu.memory_space<vmem>>, %arg14: memref<64x64xf32, #tpu.memory_space<vmem>>, %arg15: memref<64x256xf32, #tpu.memory_space<vmem>>, %arg16: memref<64x64xf32, #tpu.memory_space<vmem>>) attributes {dimension_semantics = [], scalar_prefetch = 0 : i64, scratch_operands = 4 : i64, tpu.core_type = #tpu.core_type<tc>} {
    %c0 = arith.constant 0 : index
    %c0_0 = arith.constant 0 : index
    %0 = vector.load %arg0[%c0, %c0_0] : memref<64x1xf32, #tpu.memory_space<vmem>>, vector<64x1xf32>
    %c0_1 = arith.constant 0 : index
    %c0_2 = arith.constant 0 : index
    %1 = vector.load %arg2[%c0_1, %c0_2] : memref<1x256xf32, #tpu.memory_space<vmem>>, vector<1x256xf32>
    %2 = vector.broadcast %0 : vector<64x1xf32> to vector<64x256xf32>
    %3 = vector.broadcast %1 : vector<1x256xf32> to vector<64x256xf32>
    %4 = arith.mulf %2, %3 : vector<64x256xf32>
    %c0_3 = arith.constant 0 : index
    %c0_4 = arith.constant 0 : index
    %5 = vector.load %arg1[%c0_3, %c0_4] : memref<64x1xf32, #tpu.memory_space<vmem>>, vector<64x1xf32>
    %c0_5 = arith.constant 0 : index
    %c0_6 = arith.constant 0 : index
    %6 = vector.load %arg3[%c0_5, %c0_6] : memref<1x256xf32, #tpu.memory_space<vmem>>, vector<1x256xf32>
    %7 = vector.broadcast %5 : vector<64x1xf32> to vector<64x256xf32>
    %8 = vector.broadcast %6 : vector<1x256xf32> to vector<64x256xf32>
    %9 = arith.mulf %7, %8 : vector<64x256xf32>
    %10 = arith.addf %4, %9 : vector<64x256xf32>
    %c0_7 = arith.constant 0 : index
    %c0_8 = arith.constant 0 : index
    %11 = vector.load %arg4[%c0_7, %c0_8] : memref<1x256xf32, #tpu.memory_space<vmem>>, vector<1x256xf32>
    %12 = vector.broadcast %11 : vector<1x256xf32> to vector<64x256xf32>
    %13 = arith.addf %10, %12 : vector<64x256xf32>
    %c0_9 = arith.constant 0 : index
    %c0_10 = arith.constant 0 : index
    %14 = vector.load %arg13[%c0_9, %c0_10] : memref<64x256xf32, #tpu.memory_space<vmem>>, vector<64x256xf32>
    tpu.vector_store %arg13[%c0_9, %c0_10], %13 {strides = array<i32>} : memref<64x256xf32, #tpu.memory_space<vmem>>, vector<64x256xf32>,
    %c0_11 = arith.constant 0 : index
    %c0_12 = arith.constant 0 : index
    %15 = vector.load %arg5[%c0_11, %c0_12] : memref<64x256xbf16, #tpu.memory_space<vmem>>, vector<64x256xbf16>
    %cst = arith.constant 0.000000e+00 : f32
    %16 = vector.broadcast %cst : f32 to vector<8x64xf32>
    %cst_13 = arith.constant 0.000000e+00 : f32
    %17 = vector.broadcast %cst_13 : f32 to vector<8x64xf32>
    %18 = arith.truncf %16 : vector<8x64xf32> to vector<8x64xbf16>
    %cst_14 = arith.constant dense<0.000000e+00> : vector<8x256xf32>
    %19 = tpu.matmul %18, %15, %cst_14 {dimension_numbers = #tpu.dot_dimension_numbers<[1], [0], [0], [1], [0, 0, 1, 1], [], []>} : vector<8x64xbf16>, vector<64x256xbf16>, vector<8x256xf32> -> vector<8x256xf32>
    %c0_15 = arith.constant 0 : index
    %c0_16 = arith.constant 0 : index
    %20 = vector.load %arg13[%c0_15, %c0_16] : memref<64x256xf32, #tpu.memory_space<vmem>>, vector<8x256xf32>
    %21 = arith.addf %19, %20 : vector<8x256xf32>
    %22 = vector.extract_strided_slice %21 {offsets = [0, 0], sizes = [8, 192], strides = [1, 1]} : vector<8x256xf32> to vector<8x192xf32>
    %23 = arith.negf %22 : vector<8x192xf32>
    %24 = math.exp %23 : vector<8x192xf32>
    %cst_17 = arith.constant 1.000000e+00 : f32
    %25 = vector.broadcast %cst_17 : f32 to vector<8x192xf32>
    %26 = arith.addf %25, %24 : vector<8x192xf32>
    %27 = arith.divf %25, %26 : vector<8x192xf32>
    %28 = vector.extract_strided_slice %21 {offsets = [0, 192], sizes = [8, 64], strides = [1, 1]} : vector<8x256xf32> to vector<8x64xf32>
    %29 = math.tanh %28 : vector<8x64xf32>
    %30 = vector.extract_strided_slice %27 {offsets = [0, 64], sizes = [8, 64], strides = [1, 1]} : vector<8x192xf32> to vector<8x64xf32>
    %31 = arith.mulf %30, %17 : vector<8x64xf32>
    %32 = vector.extract_strided_slice %27 {offsets = [0, 0], sizes = [8, 64], strides = [1, 1]} : vector<8x192xf32> to vector<8x64xf32>
    %33 = arith.mulf %32, %29 : vector<8x64xf32>
    %34 = arith.addf %31, %33 : vector<8x64xf32>
    %35 = vector.extract_strided_slice %27 {offsets = [0, 128], sizes = [8, 64], strides = [1, 1]} : vector<8x192xf32> to vector<8x64xf32>
    %36 = math.tanh %34 : vector<8x64xf32>
    %37 = arith.mulf %35, %36 : vector<8x64xf32>
    %c0_18 = arith.constant 0 : index
    %c0_19 = arith.constant 0 : index
    %38 = vector.load %arg14[%c0_18, %c0_19] : memref<64x64xf32, #tpu.memory_space<vmem>>, vector<8x64xf32>
    tpu.vector_store %arg14[%c0_18, %c0_19], %37 {strides = array<i32>} : memref<64x64xf32, #tpu.memory_space<vmem>>, vector<8x64xf32>,
    %39 = arith.truncf %37 : vector<8x64xf32> to vector<8x64xbf16>
    %cst_20 = arith.constant dense<0.000000e+00> : vector<8x256xf32>
    %40 = tpu.matmul %39, %15, %cst_20 {dimension_numbers = #tpu.dot_dimension_numbers<[1], [0], [0], [1], [0, 0, 1, 1], [], []>} : vector<8x64xbf16>, vector<64x256xbf16>, vector<8x256xf32> -> vector<8x256xf32>
    %c8 = arith.constant 8 : index
    %c0_21 = arith.constant 0 : index
    %41 = vector.load %arg13[%c8, %c0_21] : memref<64x256xf32, #tpu.memory_space<vmem>>, vector<8x256xf32>
    %42 = arith.addf %40, %41 : vector<8x256xf32>
    %43 = vector.extract_strided_slice %42 {offsets = [0, 0], sizes = [8, 192], strides = [1, 1]} : vector<8x256xf32> to vector<8x192xf32>
    %44 = arith.negf %43 : vector<8x192xf32>
    %45 = math.exp %44 : vector<8x192xf32>
    %cst_22 = arith.constant 1.000000e+00 : f32
    %46 = vector.broadcast %cst_22 : f32 to vector<8x192xf32>
    %47 = arith.addf %46, %45 : vector<8x192xf32>
    %48 = arith.divf %46, %47 : vector<8x192xf32>
    %49 = vector.extract_strided_slice %42 {offsets = [0, 192], sizes = [8, 64], strides = [1, 1]} : vector<8x256xf32> to vector<8x64xf32>
    %50 = math.tanh %49 : vector<8x64xf32>
    %51 = vector.extract_strided_slice %48 {offsets = [0, 64], sizes = [8, 64], strides = [1, 1]} : vector<8x192xf32> to vector<8x64xf32>
    %52 = arith.mulf %51, %34 : vector<8x64xf32>
    %53 = vector.extract_strided_slice %48 {offsets = [0, 0], sizes = [8, 64], strides = [1, 1]} : vector<8x192xf32> to vector<8x64xf32>
    %54 = arith.mulf %53, %50 : vector<8x64xf32>
    %55 = arith.addf %52, %54 : vector<8x64xf32>
    %56 = vector.extract_strided_slice %48 {offsets = [0, 128], sizes = [8, 64], strides = [1, 1]} : vector<8x192xf32> to vector<8x64xf32>
    %57 = math.tanh %55 : vector<8x64xf32>
    %58 = arith.mulf %56, %57 : vector<8x64xf32>
    %c8_23 = arith.constant 8 : index
    %c0_24 = arith.constant 0 : index
    %59 = vector.load %arg14[%c8_23, %c0_24] : memref<64x64xf32, #tpu.memory_space<vmem>>, vector<8x64xf32>
    tpu.vector_store %arg14[%c8_23, %c0_24], %58 {strides = array<i32>} : memref<64x64xf32, #tpu.memory_space<vmem>>, vector<8x64xf32>,
    %60 = arith.truncf %58 : vector<8x64xf32> to vector<8x64xbf16>
    %cst_25 = arith.constant dense<0.000000e+00> : vector<8x256xf32>
    %61 = tpu.matmul %60, %15, %cst_25 {dimension_numbers = #tpu.dot_dimension_numbers<[1], [0], [0], [1], [0, 0, 1, 1], [], []>} : vector<8x64xbf16>, vector<64x256xbf16>, vector<8x256xf32> -> vector<8x256xf32>
    %c16 = arith.constant 16 : index
    %c0_26 = arith.constant 0 : index
    %62 = vector.load %arg13[%c16, %c0_26] : memref<64x256xf32, #tpu.memory_space<vmem>>, vector<8x256xf32>
    %63 = arith.addf %61, %62 : vector<8x256xf32>
    %64 = vector.extract_strided_slice %63 {offsets = [0, 0], sizes = [8, 192], strides = [1, 1]} : vector<8x256xf32> to vector<8x192xf32>
    %65 = arith.negf %64 : vector<8x192xf32>
    %66 = math.exp %65 : vector<8x192xf32>
    %cst_27 = arith.constant 1.000000e+00 : f32
    %67 = vector.broadcast %cst_27 : f32 to vector<8x192xf32>
    %68 = arith.addf %67, %66 : vector<8x192xf32>
    %69 = arith.divf %67, %68 : vector<8x192xf32>
    %70 = vector.extract_strided_slice %63 {offsets = [0, 192], sizes = [8, 64], strides = [1, 1]} : vector<8x256xf32> to vector<8x64xf32>
    %71 = math.tanh %70 : vector<8x64xf32>
    %72 = vector.extract_strided_slice %69 {offsets = [0, 64], sizes = [8, 64], strides = [1, 1]} : vector<8x192xf32> to vector<8x64xf32>
    %73 = arith.mulf %72, %55 : vector<8x64xf32>
    %74 = vector.extract_strided_slice %69 {offsets = [0, 0], sizes = [8, 64], strides = [1, 1]} : vector<8x192xf32> to vector<8x64xf32>
    %75 = arith.mulf %74, %71 : vector<8x64xf32>
    %76 = arith.addf %73, %75 : vector<8x64xf32>
    %77 = vector.extract_strided_slice %69 {offsets = [0, 128], sizes = [8, 64], strides = [1, 1]} : vector<8x192xf32> to vector<8x64xf32>
    %78 = math.tanh %76 : vector<8x64xf32>
    %79 = arith.mulf %77, %78 : vector<8x64xf32>
    %c16_28 = arith.constant 16 : index
    %c0_29 = arith.constant 0 : index
    %80 = vector.load %arg14[%c16_28, %c0_29] : memref<64x64xf32, #tpu.memory_space<vmem>>, vector<8x64xf32>
    tpu.vector_store %arg14[%c16_28, %c0_29], %79 {strides = array<i32>} : memref<64x64xf32, #tpu.memory_space<vmem>>, vector<8x64xf32>,
    %81 = arith.truncf %79 : vector<8x64xf32> to vector<8x64xbf16>
    %cst_30 = arith.constant dense<0.000000e+00> : vector<8x256xf32>
    %82 = tpu.matmul %81, %15, %cst_30 {dimension_numbers = #tpu.dot_dimension_numbers<[1], [0], [0], [1], [0, 0, 1, 1], [], []>} : vector<8x64xbf16>, vector<64x256xbf16>, vector<8x256xf32> -> vector<8x256xf32>
    %c24 = arith.constant 24 : index
    %c0_31 = arith.constant 0 : index
    %83 = vector.load %arg13[%c24, %c0_31] : memref<64x256xf32, #tpu.memory_space<vmem>>, vector<8x256xf32>
    %84 = arith.addf %82, %83 : vector<8x256xf32>
    %85 = vector.extract_strided_slice %84 {offsets = [0, 0], sizes = [8, 192], strides = [1, 1]} : vector<8x256xf32> to vector<8x192xf32>
    %86 = arith.negf %85 : vector<8x192xf32>
    %87 = math.exp %86 : vector<8x192xf32>
    %cst_32 = arith.constant 1.000000e+00 : f32
    %88 = vector.broadcast %cst_32 : f32 to vector<8x192xf32>
    %89 = arith.addf %88, %87 : vector<8x192xf32>
    %90 = arith.divf %88, %89 : vector<8x192xf32>
    %91 = vector.extract_strided_slice %84 {offsets = [0, 192], sizes = [8, 64], strides = [1, 1]} : vector<8x256xf32> to vector<8x64xf32>
    %92 = math.tanh %91 : vector<8x64xf32>
    %93 = vector.extract_strided_slice %90 {offsets = [0, 64], sizes = [8, 64], strides = [1, 1]} : vector<8x192xf32> to vector<8x64xf32>
    %94 = arith.mulf %93, %76 : vector<8x64xf32>
    %95 = vector.extract_strided_slice %90 {offsets = [0, 0], sizes = [8, 64], strides = [1, 1]} : vector<8x192xf32> to vector<8x64xf32>
    %96 = arith.mulf %95, %92 : vector<8x64xf32>
    %97 = arith.addf %94, %96 : vector<8x64xf32>
    %98 = vector.extract_strided_slice %90 {offsets = [0, 128], sizes = [8, 64], strides = [1, 1]} : vector<8x192xf32> to vector<8x64xf32>
    %99 = math.tanh %97 : vector<8x64xf32>
    %100 = arith.mulf %98, %99 : vector<8x64xf32>
    %c24_33 = arith.constant 24 : index
    %c0_34 = arith.constant 0 : index
    %101 = vector.load %arg14[%c24_33, %c0_34] : memref<64x64xf32, #tpu.memory_space<vmem>>, vector<8x64xf32>
    tpu.vector_store %arg14[%c24_33, %c0_34], %100 {strides = array<i32>} : memref<64x64xf32, #tpu.memory_space<vmem>>, vector<8x64xf32>,
    %102 = arith.truncf %100 : vector<8x64xf32> to vector<8x64xbf16>
    %cst_35 = arith.constant dense<0.000000e+00> : vector<8x256xf32>
    %103 = tpu.matmul %102, %15, %cst_35 {dimension_numbers = #tpu.dot_dimension_numbers<[1], [0], [0], [1], [0, 0, 1, 1], [], []>} : vector<8x64xbf16>, vector<64x256xbf16>, vector<8x256xf32> -> vector<8x256xf32>
    %c32 = arith.constant 32 : index
    %c0_36 = arith.constant 0 : index
    %104 = vector.load %arg13[%c32, %c0_36] : memref<64x256xf32, #tpu.memory_space<vmem>>, vector<8x256xf32>
    %105 = arith.addf %103, %104 : vector<8x256xf32>
    %106 = vector.extract_strided_slice %105 {offsets = [0, 0], sizes = [8, 192], strides = [1, 1]} : vector<8x256xf32> to vector<8x192xf32>
    %107 = arith.negf %106 : vector<8x192xf32>
    %108 = math.exp %107 : vector<8x192xf32>
    %cst_37 = arith.constant 1.000000e+00 : f32
    %109 = vector.broadcast %cst_37 : f32 to vector<8x192xf32>
    %110 = arith.addf %109, %108 : vector<8x192xf32>
    %111 = arith.divf %109, %110 : vector<8x192xf32>
    %112 = vector.extract_strided_slice %105 {offsets = [0, 192], sizes = [8, 64], strides = [1, 1]} : vector<8x256xf32> to vector<8x64xf32>
    %113 = math.tanh %112 : vector<8x64xf32>
    %114 = vector.extract_strided_slice %111 {offsets = [0, 64], sizes = [8, 64], strides = [1, 1]} : vector<8x192xf32> to vector<8x64xf32>
    %115 = arith.mulf %114, %97 : vector<8x64xf32>
    %116 = vector.extract_strided_slice %111 {offsets = [0, 0], sizes = [8, 64], strides = [1, 1]} : vector<8x192xf32> to vector<8x64xf32>
    %117 = arith.mulf %116, %113 : vector<8x64xf32>
    %118 = arith.addf %115, %117 : vector<8x64xf32>
    %119 = vector.extract_strided_slice %111 {offsets = [0, 128], sizes = [8, 64], strides = [1, 1]} : vector<8x192xf32> to vector<8x64xf32>
    %120 = math.tanh %118 : vector<8x64xf32>
    %121 = arith.mulf %119, %120 : vector<8x64xf32>
    %c32_38 = arith.constant 32 : index
    %c0_39 = arith.constant 0 : index
    %122 = vector.load %arg14[%c32_38, %c0_39] : memref<64x64xf32, #tpu.memory_space<vmem>>, vector<8x64xf32>
    tpu.vector_store %arg14[%c32_38, %c0_39], %121 {strides = array<i32>} : memref<64x64xf32, #tpu.memory_space<vmem>>, vector<8x64xf32>,
    %123 = arith.truncf %121 : vector<8x64xf32> to vector<8x64xbf16>
    %cst_40 = arith.constant dense<0.000000e+00> : vector<8x256xf32>
    %124 = tpu.matmul %123, %15, %cst_40 {dimension_numbers = #tpu.dot_dimension_numbers<[1], [0], [0], [1], [0, 0, 1, 1], [], []>} : vector<8x64xbf16>, vector<64x256xbf16>, vector<8x256xf32> -> vector<8x256xf32>
    %c40 = arith.constant 40 : index
    %c0_41 = arith.constant 0 : index
    %125 = vector.load %arg13[%c40, %c0_41] : memref<64x256xf32, #tpu.memory_space<vmem>>, vector<8x256xf32>
    %126 = arith.addf %124, %125 : vector<8x256xf32>
    %127 = vector.extract_strided_slice %126 {offsets = [0, 0], sizes = [8, 192], strides = [1, 1]} : vector<8x256xf32> to vector<8x192xf32>
    %128 = arith.negf %127 : vector<8x192xf32>
    %129 = math.exp %128 : vector<8x192xf32>
    %cst_42 = arith.constant 1.000000e+00 : f32
    %130 = vector.broadcast %cst_42 : f32 to vector<8x192xf32>
    %131 = arith.addf %130, %129 : vector<8x192xf32>
    %132 = arith.divf %130, %131 : vector<8x192xf32>
    %133 = vector.extract_strided_slice %126 {offsets = [0, 192], sizes = [8, 64], strides = [1, 1]} : vector<8x256xf32> to vector<8x64xf32>
    %134 = math.tanh %133 : vector<8x64xf32>
    %135 = vector.extract_strided_slice %132 {offsets = [0, 64], sizes = [8, 64], strides = [1, 1]} : vector<8x192xf32> to vector<8x64xf32>
    %136 = arith.mulf %135, %118 : vector<8x64xf32>
    %137 = vector.extract_strided_slice %132 {offsets = [0, 0], sizes = [8, 64], strides = [1, 1]} : vector<8x192xf32> to vector<8x64xf32>
    %138 = arith.mulf %137, %134 : vector<8x64xf32>
    %139 = arith.addf %136, %138 : vector<8x64xf32>
    %140 = vector.extract_strided_slice %132 {offsets = [0, 128], sizes = [8, 64], strides = [1, 1]} : vector<8x192xf32> to vector<8x64xf32>
    %141 = math.tanh %139 : vector<8x64xf32>
    %142 = arith.mulf %140, %141 : vector<8x64xf32>
    %c40_43 = arith.constant 40 : index
    %c0_44 = arith.constant 0 : index
    %143 = vector.load %arg14[%c40_43, %c0_44] : memref<64x64xf32, #tpu.memory_space<vmem>>, vector<8x64xf32>
    tpu.vector_store %arg14[%c40_43, %c0_44], %142 {strides = array<i32>} : memref<64x64xf32, #tpu.memory_space<vmem>>, vector<8x64xf32>,
    %144 = arith.truncf %142 : vector<8x64xf32> to vector<8x64xbf16>
    %cst_45 = arith.constant dense<0.000000e+00> : vector<8x256xf32>
    %145 = tpu.matmul %144, %15, %cst_45 {dimension_numbers = #tpu.dot_dimension_numbers<[1], [0], [0], [1], [0, 0, 1, 1], [], []>} : vector<8x64xbf16>, vector<64x256xbf16>, vector<8x256xf32> -> vector<8x256xf32>
    %c48 = arith.constant 48 : index
    %c0_46 = arith.constant 0 : index
    %146 = vector.load %arg13[%c48, %c0_46] : memref<64x256xf32, #tpu.memory_space<vmem>>, vector<8x256xf32>
    %147 = arith.addf %145, %146 : vector<8x256xf32>
    %148 = vector.extract_strided_slice %147 {offsets = [0, 0], sizes = [8, 192], strides = [1, 1]} : vector<8x256xf32> to vector<8x192xf32>
    %149 = arith.negf %148 : vector<8x192xf32>
    %150 = math.exp %149 : vector<8x192xf32>
    %cst_47 = arith.constant 1.000000e+00 : f32
    %151 = vector.broadcast %cst_47 : f32 to vector<8x192xf32>
    %152 = arith.addf %151, %150 : vector<8x192xf32>
    %153 = arith.divf %151, %152 : vector<8x192xf32>
    %154 = vector.extract_strided_slice %147 {offsets = [0, 192], sizes = [8, 64], strides = [1, 1]} : vector<8x256xf32> to vector<8x64xf32>
    %155 = math.tanh %154 : vector<8x64xf32>
    %156 = vector.extract_strided_slice %153 {offsets = [0, 64], sizes = [8, 64], strides = [1, 1]} : vector<8x192xf32> to vector<8x64xf32>
    %157 = arith.mulf %156, %139 : vector<8x64xf32>
    %158 = vector.extract_strided_slice %153 {offsets = [0, 0], sizes = [8, 64], strides = [1, 1]} : vector<8x192xf32> to vector<8x64xf32>
    %159 = arith.mulf %158, %155 : vector<8x64xf32>
    %160 = arith.addf %157, %159 : vector<8x64xf32>
    %161 = vector.extract_strided_slice %153 {offsets = [0, 128], sizes = [8, 64], strides = [1, 1]} : vector<8x192xf32> to vector<8x64xf32>
    %162 = math.tanh %160 : vector<8x64xf32>
    %163 = arith.mulf %161, %162 : vector<8x64xf32>
    %c48_48 = arith.constant 48 : index
    %c0_49 = arith.constant 0 : index
    %164 = vector.load %arg14[%c48_48, %c0_49] : memref<64x64xf32, #tpu.memory_space<vmem>>, vector<8x64xf32>
    tpu.vector_store %arg14[%c48_48, %c0_49], %163 {strides = array<i32>} : memref<64x64xf32, #tpu.memory_space<vmem>>, vector<8x64xf32>,
    %165 = arith.truncf %163 : vector<8x64xf32> to vector<8x64xbf16>
    %cst_50 = arith.constant dense<0.000000e+00> : vector<8x256xf32>
    %166 = tpu.matmul %165, %15, %cst_50 {dimension_numbers = #tpu.dot_dimension_numbers<[1], [0], [0], [1], [0, 0, 1, 1], [], []>} : vector<8x64xbf16>, vector<64x256xbf16>, vector<8x256xf32> -> vector<8x256xf32>
    %c56 = arith.constant 56 : index
    %c0_51 = arith.constant 0 : index
    %167 = vector.load %arg13[%c56, %c0_51] : memref<64x256xf32, #tpu.memory_space<vmem>>, vector<8x256xf32>
    %168 = arith.addf %166, %167 : vector<8x256xf32>
    %169 = vector.extract_strided_slice %168 {offsets = [0, 0], sizes = [8, 192], strides = [1, 1]} : vector<8x256xf32> to vector<8x192xf32>
    %170 = arith.negf %169 : vector<8x192xf32>
    %171 = math.exp %170 : vector<8x192xf32>
    %cst_52 = arith.constant 1.000000e+00 : f32
    %172 = vector.broadcast %cst_52 : f32 to vector<8x192xf32>
    %173 = arith.addf %172, %171 : vector<8x192xf32>
    %174 = arith.divf %172, %173 : vector<8x192xf32>
    %175 = vector.extract_strided_slice %168 {offsets = [0, 192], sizes = [8, 64], strides = [1, 1]} : vector<8x256xf32> to vector<8x64xf32>
    %176 = math.tanh %175 : vector<8x64xf32>
    %177 = vector.extract_strided_slice %174 {offsets = [0, 64], sizes = [8, 64], strides = [1, 1]} : vector<8x192xf32> to vector<8x64xf32>
    %178 = arith.mulf %177, %160 : vector<8x64xf32>
    %179 = vector.extract_strided_slice %174 {offsets = [0, 0], sizes = [8, 64], strides = [1, 1]} : vector<8x192xf32> to vector<8x64xf32>
    %180 = arith.mulf %179, %176 : vector<8x64xf32>
    %181 = arith.addf %178, %180 : vector<8x64xf32>
    %182 = vector.extract_strided_slice %174 {offsets = [0, 128], sizes = [8, 64], strides = [1, 1]} : vector<8x192xf32> to vector<8x64xf32>
    %183 = math.tanh %181 : vector<8x64xf32>
    %184 = arith.mulf %182, %183 : vector<8x64xf32>
    %c56_53 = arith.constant 56 : index
    %c0_54 = arith.constant 0 : index
    %185 = vector.load %arg14[%c56_53, %c0_54] : memref<64x64xf32, #tpu.memory_space<vmem>>, vector<8x64xf32>
    tpu.vector_store %arg14[%c56_53, %c0_54], %184 {strides = array<i32>} : memref<64x64xf32, #tpu.memory_space<vmem>>, vector<8x64xf32>,
    %c0_55 = arith.constant 0 : index
    %c0_56 = arith.constant 0 : index
    %186 = vector.load %arg14[%c0_55, %c0_56] : memref<64x64xf32, #tpu.memory_space<vmem>>, vector<64x64xf32>
    %187 = arith.truncf %186 : vector<64x64xf32> to vector<64x64xbf16>
    %c0_57 = arith.constant 0 : index
    %c0_58 = arith.constant 0 : index
    %188 = vector.load %arg6[%c0_57, %c0_58] : memref<64x256xbf16, #tpu.memory_space<vmem>>, vector<64x256xbf16>
    %cst_59 = arith.constant dense<0.000000e+00> : vector<64x256xf32>
    %189 = tpu.matmul %187, %188, %cst_59 {dimension_numbers = #tpu.dot_dimension_numbers<[1], [0], [0], [1], [0, 0, 1, 1], [], []>} : vector<64x64xbf16>, vector<64x256xbf16>, vector<64x256xf32> -> vector<64x256xf32>
    %c0_60 = arith.constant 0 : index
    %c0_61 = arith.constant 0 : index
    %190 = vector.load %arg8[%c0_60, %c0_61] : memref<1x256xf32, #tpu.memory_space<vmem>>, vector<1x256xf32>
    %191 = vector.broadcast %190 : vector<1x256xf32> to vector<64x256xf32>
    %192 = arith.addf %189, %191 : vector<64x256xf32>
    %c0_62 = arith.constant 0 : index
    %c0_63 = arith.constant 0 : index
    %193 = vector.load %arg15[%c0_62, %c0_63] : memref<64x256xf32, #tpu.memory_space<vmem>>, vector<64x256xf32>
    tpu.vector_store %arg15[%c0_62, %c0_63], %192 {strides = array<i32>} : memref<64x256xf32, #tpu.memory_space<vmem>>, vector<64x256xf32>,
    %c0_64 = arith.constant 0 : index
    %c0_65 = arith.constant 0 : index
    %194 = vector.load %arg7[%c0_64, %c0_65] : memref<64x256xbf16, #tpu.memory_space<vmem>>, vector<64x256xbf16>
    %cst_66 = arith.constant dense<0.000000e+00> : vector<64x256xf32>
    %195 = tpu.matmul %187, %194, %cst_66 {dimension_numbers = #tpu.dot_dimension_numbers<[1], [0], [0], [1], [0, 0, 1, 1], [], []>} : vector<64x64xbf16>, vector<64x256xbf16>, vector<64x256xf32> -> vector<64x256xf32>
    %c0_67 = arith.constant 0 : index
    %c0_68 = arith.constant 0 : index
    %196 = vector.load %arg15[%c0_67, %c0_68] : memref<64x256xf32, #tpu.memory_space<vmem>>, vector<8x256xf32>
    %197 = vector.extract_strided_slice %195 {offsets = [56, 0], sizes = [8, 256], strides = [1, 1]} : vector<64x256xf32> to vector<8x256xf32>
    %198 = arith.addf %196, %197 : vector<8x256xf32>
    %c0_69 = arith.constant 0 : index
    %c0_70 = arith.constant 0 : index
    %199 = vector.load %arg15[%c0_69, %c0_70] : memref<64x256xf32, #tpu.memory_space<vmem>>, vector<8x256xf32>
    tpu.vector_store %arg15[%c0_69, %c0_70], %198 {strides = array<i32>} : memref<64x256xf32, #tpu.memory_space<vmem>>, vector<8x256xf32>,
    %c8_71 = arith.constant 8 : index
    %c0_72 = arith.constant 0 : index
    %200 = vector.load %arg15[%c8_71, %c0_72] : memref<64x256xf32, #tpu.memory_space<vmem>>, vector<8x256xf32>
    %201 = vector.extract_strided_slice %195 {offsets = [48, 0], sizes = [8, 256], strides = [1, 1]} : vector<64x256xf32> to vector<8x256xf32>
    %202 = arith.addf %200, %201 : vector<8x256xf32>
    %c8_73 = arith.constant 8 : index
    %c0_74 = arith.constant 0 : index
    %203 = vector.load %arg15[%c8_73, %c0_74] : memref<64x256xf32, #tpu.memory_space<vmem>>, vector<8x256xf32>
    tpu.vector_store %arg15[%c8_73, %c0_74], %202 {strides = array<i32>} : memref<64x256xf32, #tpu.memory_space<vmem>>, vector<8x256xf32>,
    %c16_75 = arith.constant 16 : index
    %c0_76 = arith.constant 0 : index
    %204 = vector.load %arg15[%c16_75, %c0_76] : memref<64x256xf32, #tpu.memory_space<vmem>>, vector<8x256xf32>
    %205 = vector.extract_strided_slice %195 {offsets = [40, 0], sizes = [8, 256], strides = [1, 1]} : vector<64x256xf32> to vector<8x256xf32>
    %206 = arith.addf %204, %205 : vector<8x256xf32>
    %c16_77 = arith.constant 16 : index
    %c0_78 = arith.constant 0 : index
    %207 = vector.load %arg15[%c16_77, %c0_78] : memref<64x256xf32, #tpu.memory_space<vmem>>, vector<8x256xf32>
    tpu.vector_store %arg15[%c16_77, %c0_78], %206 {strides = array<i32>} : memref<64x256xf32, #tpu.memory_space<vmem>>, vector<8x256xf32>,
    %c24_79 = arith.constant 24 : index
    %c0_80 = arith.constant 0 : index
    %208 = vector.load %arg15[%c24_79, %c0_80] : memref<64x256xf32, #tpu.memory_space<vmem>>, vector<8x256xf32>
    %209 = vector.extract_strided_slice %195 {offsets = [32, 0], sizes = [8, 256], strides = [1, 1]} : vector<64x256xf32> to vector<8x256xf32>
    %210 = arith.addf %208, %209 : vector<8x256xf32>
    %c24_81 = arith.constant 24 : index
    %c0_82 = arith.constant 0 : index
    %211 = vector.load %arg15[%c24_81, %c0_82] : memref<64x256xf32, #tpu.memory_space<vmem>>, vector<8x256xf32>
    tpu.vector_store %arg15[%c24_81, %c0_82], %210 {strides = array<i32>} : memref<64x256xf32, #tpu.memory_space<vmem>>, vector<8x256xf32>,
    %c32_83 = arith.constant 32 : index
    %c0_84 = arith.constant 0 : index
    %212 = vector.load %arg15[%c32_83, %c0_84] : memref<64x256xf32, #tpu.memory_space<vmem>>, vector<8x256xf32>
    %213 = vector.extract_strided_slice %195 {offsets = [24, 0], sizes = [8, 256], strides = [1, 1]} : vector<64x256xf32> to vector<8x256xf32>
    %214 = arith.addf %212, %213 : vector<8x256xf32>
    %c32_85 = arith.constant 32 : index
    %c0_86 = arith.constant 0 : index
    %215 = vector.load %arg15[%c32_85, %c0_86] : memref<64x256xf32, #tpu.memory_space<vmem>>, vector<8x256xf32>
    tpu.vector_store %arg15[%c32_85, %c0_86], %214 {strides = array<i32>} : memref<64x256xf32, #tpu.memory_space<vmem>>, vector<8x256xf32>,
    %c40_87 = arith.constant 40 : index
    %c0_88 = arith.constant 0 : index
    %216 = vector.load %arg15[%c40_87, %c0_88] : memref<64x256xf32, #tpu.memory_space<vmem>>, vector<8x256xf32>
    %217 = vector.extract_strided_slice %195 {offsets = [16, 0], sizes = [8, 256], strides = [1, 1]} : vector<64x256xf32> to vector<8x256xf32>
    %218 = arith.addf %216, %217 : vector<8x256xf32>
    %c40_89 = arith.constant 40 : index
    %c0_90 = arith.constant 0 : index
    %219 = vector.load %arg15[%c40_89, %c0_90] : memref<64x256xf32, #tpu.memory_space<vmem>>, vector<8x256xf32>
    tpu.vector_store %arg15[%c40_89, %c0_90], %218 {strides = array<i32>} : memref<64x256xf32, #tpu.memory_space<vmem>>, vector<8x256xf32>,
    %c48_91 = arith.constant 48 : index
    %c0_92 = arith.constant 0 : index
    %220 = vector.load %arg15[%c48_91, %c0_92] : memref<64x256xf32, #tpu.memory_space<vmem>>, vector<8x256xf32>
    %221 = vector.extract_strided_slice %195 {offsets = [8, 0], sizes = [8, 256], strides = [1, 1]} : vector<64x256xf32> to vector<8x256xf32>
    %222 = arith.addf %220, %221 : vector<8x256xf32>
    %c48_93 = arith.constant 48 : index
    %c0_94 = arith.constant 0 : index
    %223 = vector.load %arg15[%c48_93, %c0_94] : memref<64x256xf32, #tpu.memory_space<vmem>>, vector<8x256xf32>
    tpu.vector_store %arg15[%c48_93, %c0_94], %222 {strides = array<i32>} : memref<64x256xf32, #tpu.memory_space<vmem>>, vector<8x256xf32>,
    %c56_95 = arith.constant 56 : index
    %c0_96 = arith.constant 0 : index
    %224 = vector.load %arg15[%c56_95, %c0_96] : memref<64x256xf32, #tpu.memory_space<vmem>>, vector<8x256xf32>
    %225 = vector.extract_strided_slice %195 {offsets = [0, 0], sizes = [8, 256], strides = [1, 1]} : vector<64x256xf32> to vector<8x256xf32>
    %226 = arith.addf %224, %225 : vector<8x256xf32>
    %c56_97 = arith.constant 56 : index
    %c0_98 = arith.constant 0 : index
    %227 = vector.load %arg15[%c56_97, %c0_98] : memref<64x256xf32, #tpu.memory_space<vmem>>, vector<8x256xf32>
    tpu.vector_store %arg15[%c56_97, %c0_98], %226 {strides = array<i32>} : memref<64x256xf32, #tpu.memory_space<vmem>>, vector<8x256xf32>,
    %c0_99 = arith.constant 0 : index
    %c0_100 = arith.constant 0 : index
    %228 = vector.load %arg9[%c0_99, %c0_100] : memref<64x256xbf16, #tpu.memory_space<vmem>>, vector<64x256xbf16>
    %cst_101 = arith.constant 0.000000e+00 : f32
    %229 = vector.broadcast %cst_101 : f32 to vector<8x64xf32>
    %cst_102 = arith.constant 0.000000e+00 : f32
    %230 = vector.broadcast %cst_102 : f32 to vector<8x64xf32>
    %231 = arith.truncf %229 : vector<8x64xf32> to vector<8x64xbf16>
    %cst_103 = arith.constant dense<0.000000e+00> : vector<8x256xf32>
    %232 = tpu.matmul %231, %228, %cst_103 {dimension_numbers = #tpu.dot_dimension_numbers<[1], [0], [0], [1], [0, 0, 1, 1], [], []>} : vector<8x64xbf16>, vector<64x256xbf16>, vector<8x256xf32> -> vector<8x256xf32>
    %c0_104 = arith.constant 0 : index
    %c0_105 = arith.constant 0 : index
    %233 = vector.load %arg15[%c0_104, %c0_105] : memref<64x256xf32, #tpu.memory_space<vmem>>, vector<8x256xf32>
    %234 = arith.addf %232, %233 : vector<8x256xf32>
    %235 = vector.extract_strided_slice %234 {offsets = [0, 0], sizes = [8, 192], strides = [1, 1]} : vector<8x256xf32> to vector<8x192xf32>
    %236 = arith.negf %235 : vector<8x192xf32>
    %237 = math.exp %236 : vector<8x192xf32>
    %cst_106 = arith.constant 1.000000e+00 : f32
    %238 = vector.broadcast %cst_106 : f32 to vector<8x192xf32>
    %239 = arith.addf %238, %237 : vector<8x192xf32>
    %240 = arith.divf %238, %239 : vector<8x192xf32>
    %241 = vector.extract_strided_slice %234 {offsets = [0, 192], sizes = [8, 64], strides = [1, 1]} : vector<8x256xf32> to vector<8x64xf32>
    %242 = math.tanh %241 : vector<8x64xf32>
    %243 = vector.extract_strided_slice %240 {offsets = [0, 64], sizes = [8, 64], strides = [1, 1]} : vector<8x192xf32> to vector<8x64xf32>
    %244 = arith.mulf %243, %230 : vector<8x64xf32>
    %245 = vector.extract_strided_slice %240 {offsets = [0, 0], sizes = [8, 64], strides = [1, 1]} : vector<8x192xf32> to vector<8x64xf32>
    %246 = arith.mulf %245, %242 : vector<8x64xf32>
    %247 = arith.addf %244, %246 : vector<8x64xf32>
    %248 = vector.extract_strided_slice %240 {offsets = [0, 128], sizes = [8, 64], strides = [1, 1]} : vector<8x192xf32> to vector<8x64xf32>
    %249 = math.tanh %247 : vector<8x64xf32>
    %250 = arith.mulf %248, %249 : vector<8x64xf32>
    %251 = vector.extract_strided_slice %250 {offsets = [0, 0], sizes = [8, 32], strides = [1, 1]} : vector<8x64xf32> to vector<8x32xf32>
    %c0_107 = arith.constant 0 : index
    %c0_108 = arith.constant 0 : index
    %252 = vector.load %arg16[%c0_107, %c0_108] : memref<64x64xf32, #tpu.memory_space<vmem>>, vector<8x32xf32>
    tpu.vector_store %arg16[%c0_107, %c0_108], %251 {strides = array<i32>} : memref<64x64xf32, #tpu.memory_space<vmem>>, vector<8x32xf32>,
    %253 = vector.extract_strided_slice %250 {offsets = [0, 32], sizes = [8, 32], strides = [1, 1]} : vector<8x64xf32> to vector<8x32xf32>
    %c56_109 = arith.constant 56 : index
    %c32_110 = arith.constant 32 : index
    %254 = vector.load %arg16[%c56_109, %c32_110] : memref<64x64xf32, #tpu.memory_space<vmem>>, vector<8x32xf32>
    tpu.vector_store %arg16[%c56_109, %c32_110], %253 {strides = array<i32>} : memref<64x64xf32, #tpu.memory_space<vmem>>, vector<8x32xf32>,
    %255 = arith.truncf %250 : vector<8x64xf32> to vector<8x64xbf16>
    %cst_111 = arith.constant dense<0.000000e+00> : vector<8x256xf32>
    %256 = tpu.matmul %255, %228, %cst_111 {dimension_numbers = #tpu.dot_dimension_numbers<[1], [0], [0], [1], [0, 0, 1, 1], [], []>} : vector<8x64xbf16>, vector<64x256xbf16>, vector<8x256xf32> -> vector<8x256xf32>
    %c8_112 = arith.constant 8 : index
    %c0_113 = arith.constant 0 : index
    %257 = vector.load %arg15[%c8_112, %c0_113] : memref<64x256xf32, #tpu.memory_space<vmem>>, vector<8x256xf32>
    %258 = arith.addf %256, %257 : vector<8x256xf32>
    %259 = vector.extract_strided_slice %258 {offsets = [0, 0], sizes = [8, 192], strides = [1, 1]} : vector<8x256xf32> to vector<8x192xf32>
    %260 = arith.negf %259 : vector<8x192xf32>
    %261 = math.exp %260 : vector<8x192xf32>
    %cst_114 = arith.constant 1.000000e+00 : f32
    %262 = vector.broadcast %cst_114 : f32 to vector<8x192xf32>
    %263 = arith.addf %262, %261 : vector<8x192xf32>
    %264 = arith.divf %262, %263 : vector<8x192xf32>
    %265 = vector.extract_strided_slice %258 {offsets = [0, 192], sizes = [8, 64], strides = [1, 1]} : vector<8x256xf32> to vector<8x64xf32>
    %266 = math.tanh %265 : vector<8x64xf32>
    %267 = vector.extract_strided_slice %264 {offsets = [0, 64], sizes = [8, 64], strides = [1, 1]} : vector<8x192xf32> to vector<8x64xf32>
    %268 = arith.mulf %267, %247 : vector<8x64xf32>
    %269 = vector.extract_strided_slice %264 {offsets = [0, 0], sizes = [8, 64], strides = [1, 1]} : vector<8x192xf32> to vector<8x64xf32>
    %270 = arith.mulf %269, %266 : vector<8x64xf32>
    %271 = arith.addf %268, %270 : vector<8x64xf32>
    %272 = vector.extract_strided_slice %264 {offsets = [0, 128], sizes = [8, 64], strides = [1, 1]} : vector<8x192xf32> to vector<8x64xf32>
    %273 = math.tanh %271 : vector<8x64xf32>
    %274 = arith.mulf %272, %273 : vector<8x64xf32>
    %275 = vector.extract_strided_slice %274 {offsets = [0, 0], sizes = [8, 32], strides = [1, 1]} : vector<8x64xf32> to vector<8x32xf32>
    %c8_115 = arith.constant 8 : index
    %c0_116 = arith.constant 0 : index
    %276 = vector.load %arg16[%c8_115, %c0_116] : memref<64x64xf32, #tpu.memory_space<vmem>>, vector<8x32xf32>
    tpu.vector_store %arg16[%c8_115, %c0_116], %275 {strides = array<i32>} : memref<64x64xf32, #tpu.memory_space<vmem>>, vector<8x32xf32>,
    %277 = vector.extract_strided_slice %274 {offsets = [0, 32], sizes = [8, 32], strides = [1, 1]} : vector<8x64xf32> to vector<8x32xf32>
    %c48_117 = arith.constant 48 : index
    %c32_118 = arith.constant 32 : index
    %278 = vector.load %arg16[%c48_117, %c32_118] : memref<64x64xf32, #tpu.memory_space<vmem>>, vector<8x32xf32>
    tpu.vector_store %arg16[%c48_117, %c32_118], %277 {strides = array<i32>} : memref<64x64xf32, #tpu.memory_space<vmem>>, vector<8x32xf32>,
    %279 = arith.truncf %274 : vector<8x64xf32> to vector<8x64xbf16>
    %cst_119 = arith.constant dense<0.000000e+00> : vector<8x256xf32>
    %280 = tpu.matmul %279, %228, %cst_119 {dimension_numbers = #tpu.dot_dimension_numbers<[1], [0], [0], [1], [0, 0, 1, 1], [], []>} : vector<8x64xbf16>, vector<64x256xbf16>, vector<8x256xf32> -> vector<8x256xf32>
    %c16_120 = arith.constant 16 : index
    %c0_121 = arith.constant 0 : index
    %281 = vector.load %arg15[%c16_120, %c0_121] : memref<64x256xf32, #tpu.memory_space<vmem>>, vector<8x256xf32>
    %282 = arith.addf %280, %281 : vector<8x256xf32>
    %283 = vector.extract_strided_slice %282 {offsets = [0, 0], sizes = [8, 192], strides = [1, 1]} : vector<8x256xf32> to vector<8x192xf32>
    %284 = arith.negf %283 : vector<8x192xf32>
    %285 = math.exp %284 : vector<8x192xf32>
    %cst_122 = arith.constant 1.000000e+00 : f32
    %286 = vector.broadcast %cst_122 : f32 to vector<8x192xf32>
    %287 = arith.addf %286, %285 : vector<8x192xf32>
    %288 = arith.divf %286, %287 : vector<8x192xf32>
    %289 = vector.extract_strided_slice %282 {offsets = [0, 192], sizes = [8, 64], strides = [1, 1]} : vector<8x256xf32> to vector<8x64xf32>
    %290 = math.tanh %289 : vector<8x64xf32>
    %291 = vector.extract_strided_slice %288 {offsets = [0, 64], sizes = [8, 64], strides = [1, 1]} : vector<8x192xf32> to vector<8x64xf32>
    %292 = arith.mulf %291, %271 : vector<8x64xf32>
    %293 = vector.extract_strided_slice %288 {offsets = [0, 0], sizes = [8, 64], strides = [1, 1]} : vector<8x192xf32> to vector<8x64xf32>
    %294 = arith.mulf %293, %290 : vector<8x64xf32>
    %295 = arith.addf %292, %294 : vector<8x64xf32>
    %296 = vector.extract_strided_slice %288 {offsets = [0, 128], sizes = [8, 64], strides = [1, 1]} : vector<8x192xf32> to vector<8x64xf32>
    %297 = math.tanh %295 : vector<8x64xf32>
    %298 = arith.mulf %296, %297 : vector<8x64xf32>
    %299 = vector.extract_strided_slice %298 {offsets = [0, 0], sizes = [8, 32], strides = [1, 1]} : vector<8x64xf32> to vector<8x32xf32>
    %c16_123 = arith.constant 16 : index
    %c0_124 = arith.constant 0 : index
    %300 = vector.load %arg16[%c16_123, %c0_124] : memref<64x64xf32, #tpu.memory_space<vmem>>, vector<8x32xf32>
    tpu.vector_store %arg16[%c16_123, %c0_124], %299 {strides = array<i32>} : memref<64x64xf32, #tpu.memory_space<vmem>>, vector<8x32xf32>,
    %301 = vector.extract_strided_slice %298 {offsets = [0, 32], sizes = [8, 32], strides = [1, 1]} : vector<8x64xf32> to vector<8x32xf32>
    %c40_125 = arith.constant 40 : index
    %c32_126 = arith.constant 32 : index
    %302 = vector.load %arg16[%c40_125, %c32_126] : memref<64x64xf32, #tpu.memory_space<vmem>>, vector<8x32xf32>
    tpu.vector_store %arg16[%c40_125, %c32_126], %301 {strides = array<i32>} : memref<64x64xf32, #tpu.memory_space<vmem>>, vector<8x32xf32>,
    %303 = arith.truncf %298 : vector<8x64xf32> to vector<8x64xbf16>
    %cst_127 = arith.constant dense<0.000000e+00> : vector<8x256xf32>
    %304 = tpu.matmul %303, %228, %cst_127 {dimension_numbers = #tpu.dot_dimension_numbers<[1], [0], [0], [1], [0, 0, 1, 1], [], []>} : vector<8x64xbf16>, vector<64x256xbf16>, vector<8x256xf32> -> vector<8x256xf32>
    %c24_128 = arith.constant 24 : index
    %c0_129 = arith.constant 0 : index
    %305 = vector.load %arg15[%c24_128, %c0_129] : memref<64x256xf32, #tpu.memory_space<vmem>>, vector<8x256xf32>
    %306 = arith.addf %304, %305 : vector<8x256xf32>
    %307 = vector.extract_strided_slice %306 {offsets = [0, 0], sizes = [8, 192], strides = [1, 1]} : vector<8x256xf32> to vector<8x192xf32>
    %308 = arith.negf %307 : vector<8x192xf32>
    %309 = math.exp %308 : vector<8x192xf32>
    %cst_130 = arith.constant 1.000000e+00 : f32
    %310 = vector.broadcast %cst_130 : f32 to vector<8x192xf32>
    %311 = arith.addf %310, %309 : vector<8x192xf32>
    %312 = arith.divf %310, %311 : vector<8x192xf32>
    %313 = vector.extract_strided_slice %306 {offsets = [0, 192], sizes = [8, 64], strides = [1, 1]} : vector<8x256xf32> to vector<8x64xf32>
    %314 = math.tanh %313 : vector<8x64xf32>
    %315 = vector.extract_strided_slice %312 {offsets = [0, 64], sizes = [8, 64], strides = [1, 1]} : vector<8x192xf32> to vector<8x64xf32>
    %316 = arith.mulf %315, %295 : vector<8x64xf32>
    %317 = vector.extract_strided_slice %312 {offsets = [0, 0], sizes = [8, 64], strides = [1, 1]} : vector<8x192xf32> to vector<8x64xf32>
    %318 = arith.mulf %317, %314 : vector<8x64xf32>
    %319 = arith.addf %316, %318 : vector<8x64xf32>
    %320 = vector.extract_strided_slice %312 {offsets = [0, 128], sizes = [8, 64], strides = [1, 1]} : vector<8x192xf32> to vector<8x64xf32>
    %321 = math.tanh %319 : vector<8x64xf32>
    %322 = arith.mulf %320, %321 : vector<8x64xf32>
    %323 = vector.extract_strided_slice %322 {offsets = [0, 0], sizes = [8, 32], strides = [1, 1]} : vector<8x64xf32> to vector<8x32xf32>
    %c24_131 = arith.constant 24 : index
    %c0_132 = arith.constant 0 : index
    %324 = vector.load %arg16[%c24_131, %c0_132] : memref<64x64xf32, #tpu.memory_space<vmem>>, vector<8x32xf32>
    tpu.vector_store %arg16[%c24_131, %c0_132], %323 {strides = array<i32>} : memref<64x64xf32, #tpu.memory_space<vmem>>, vector<8x32xf32>,
    %325 = vector.extract_strided_slice %322 {offsets = [0, 32], sizes = [8, 32], strides = [1, 1]} : vector<8x64xf32> to vector<8x32xf32>
    %c32_133 = arith.constant 32 : index
    %c32_134 = arith.constant 32 : index
    %326 = vector.load %arg16[%c32_133, %c32_134] : memref<64x64xf32, #tpu.memory_space<vmem>>, vector<8x32xf32>
    tpu.vector_store %arg16[%c32_133, %c32_134], %325 {strides = array<i32>} : memref<64x64xf32, #tpu.memory_space<vmem>>, vector<8x32xf32>,
    %327 = arith.truncf %322 : vector<8x64xf32> to vector<8x64xbf16>
    %cst_135 = arith.constant dense<0.000000e+00> : vector<8x256xf32>
    %328 = tpu.matmul %327, %228, %cst_135 {dimension_numbers = #tpu.dot_dimension_numbers<[1], [0], [0], [1], [0, 0, 1, 1], [], []>} : vector<8x64xbf16>, vector<64x256xbf16>, vector<8x256xf32> -> vector<8x256xf32>
    %c32_136 = arith.constant 32 : index
    %c0_137 = arith.constant 0 : index
    %329 = vector.load %arg15[%c32_136, %c0_137] : memref<64x256xf32, #tpu.memory_space<vmem>>, vector<8x256xf32>
    %330 = arith.addf %328, %329 : vector<8x256xf32>
    %331 = vector.extract_strided_slice %330 {offsets = [0, 0], sizes = [8, 192], strides = [1, 1]} : vector<8x256xf32> to vector<8x192xf32>
    %332 = arith.negf %331 : vector<8x192xf32>
    %333 = math.exp %332 : vector<8x192xf32>
    %cst_138 = arith.constant 1.000000e+00 : f32
    %334 = vector.broadcast %cst_138 : f32 to vector<8x192xf32>
    %335 = arith.addf %334, %333 : vector<8x192xf32>
    %336 = arith.divf %334, %335 : vector<8x192xf32>
    %337 = vector.extract_strided_slice %330 {offsets = [0, 192], sizes = [8, 64], strides = [1, 1]} : vector<8x256xf32> to vector<8x64xf32>
    %338 = math.tanh %337 : vector<8x64xf32>
    %339 = vector.extract_strided_slice %336 {offsets = [0, 64], sizes = [8, 64], strides = [1, 1]} : vector<8x192xf32> to vector<8x64xf32>
    %340 = arith.mulf %339, %319 : vector<8x64xf32>
    %341 = vector.extract_strided_slice %336 {offsets = [0, 0], sizes = [8, 64], strides = [1, 1]} : vector<8x192xf32> to vector<8x64xf32>
    %342 = arith.mulf %341, %338 : vector<8x64xf32>
    %343 = arith.addf %340, %342 : vector<8x64xf32>
    %344 = vector.extract_strided_slice %336 {offsets = [0, 128], sizes = [8, 64], strides = [1, 1]} : vector<8x192xf32> to vector<8x64xf32>
    %345 = math.tanh %343 : vector<8x64xf32>
    %346 = arith.mulf %344, %345 : vector<8x64xf32>
    %347 = vector.extract_strided_slice %346 {offsets = [0, 0], sizes = [8, 32], strides = [1, 1]} : vector<8x64xf32> to vector<8x32xf32>
    %c32_139 = arith.constant 32 : index
    %c0_140 = arith.constant 0 : index
    %348 = vector.load %arg16[%c32_139, %c0_140] : memref<64x64xf32, #tpu.memory_space<vmem>>, vector<8x32xf32>
    tpu.vector_store %arg16[%c32_139, %c0_140], %347 {strides = array<i32>} : memref<64x64xf32, #tpu.memory_space<vmem>>, vector<8x32xf32>,
    %349 = vector.extract_strided_slice %346 {offsets = [0, 32], sizes = [8, 32], strides = [1, 1]} : vector<8x64xf32> to vector<8x32xf32>
    %c24_141 = arith.constant 24 : index
    %c32_142 = arith.constant 32 : index
    %350 = vector.load %arg16[%c24_141, %c32_142] : memref<64x64xf32, #tpu.memory_space<vmem>>, vector<8x32xf32>
    tpu.vector_store %arg16[%c24_141, %c32_142], %349 {strides = array<i32>} : memref<64x64xf32, #tpu.memory_space<vmem>>, vector<8x32xf32>,
    %351 = arith.truncf %346 : vector<8x64xf32> to vector<8x64xbf16>
    %cst_143 = arith.constant dense<0.000000e+00> : vector<8x256xf32>
    %352 = tpu.matmul %351, %228, %cst_143 {dimension_numbers = #tpu.dot_dimension_numbers<[1], [0], [0], [1], [0, 0, 1, 1], [], []>} : vector<8x64xbf16>, vector<64x256xbf16>, vector<8x256xf32> -> vector<8x256xf32>
    %c40_144 = arith.constant 40 : index
    %c0_145 = arith.constant 0 : index
    %353 = vector.load %arg15[%c40_144, %c0_145] : memref<64x256xf32, #tpu.memory_space<vmem>>, vector<8x256xf32>
    %354 = arith.addf %352, %353 : vector<8x256xf32>
    %355 = vector.extract_strided_slice %354 {offsets = [0, 0], sizes = [8, 192], strides = [1, 1]} : vector<8x256xf32> to vector<8x192xf32>
    %356 = arith.negf %355 : vector<8x192xf32>
    %357 = math.exp %356 : vector<8x192xf32>
    %cst_146 = arith.constant 1.000000e+00 : f32
    %358 = vector.broadcast %cst_146 : f32 to vector<8x192xf32>
    %359 = arith.addf %358, %357 : vector<8x192xf32>
    %360 = arith.divf %358, %359 : vector<8x192xf32>
    %361 = vector.extract_strided_slice %354 {offsets = [0, 192], sizes = [8, 64], strides = [1, 1]} : vector<8x256xf32> to vector<8x64xf32>
    %362 = math.tanh %361 : vector<8x64xf32>
    %363 = vector.extract_strided_slice %360 {offsets = [0, 64], sizes = [8, 64], strides = [1, 1]} : vector<8x192xf32> to vector<8x64xf32>
    %364 = arith.mulf %363, %343 : vector<8x64xf32>
    %365 = vector.extract_strided_slice %360 {offsets = [0, 0], sizes = [8, 64], strides = [1, 1]} : vector<8x192xf32> to vector<8x64xf32>
    %366 = arith.mulf %365, %362 : vector<8x64xf32>
    %367 = arith.addf %364, %366 : vector<8x64xf32>
    %368 = vector.extract_strided_slice %360 {offsets = [0, 128], sizes = [8, 64], strides = [1, 1]} : vector<8x192xf32> to vector<8x64xf32>
    %369 = math.tanh %367 : vector<8x64xf32>
    %370 = arith.mulf %368, %369 : vector<8x64xf32>
    %371 = vector.extract_strided_slice %370 {offsets = [0, 0], sizes = [8, 32], strides = [1, 1]} : vector<8x64xf32> to vector<8x32xf32>
    %c40_147 = arith.constant 40 : index
    %c0_148 = arith.constant 0 : index
    %372 = vector.load %arg16[%c40_147, %c0_148] : memref<64x64xf32, #tpu.memory_space<vmem>>, vector<8x32xf32>
    tpu.vector_store %arg16[%c40_147, %c0_148], %371 {strides = array<i32>} : memref<64x64xf32, #tpu.memory_space<vmem>>, vector<8x32xf32>,
    %373 = vector.extract_strided_slice %370 {offsets = [0, 32], sizes = [8, 32], strides = [1, 1]} : vector<8x64xf32> to vector<8x32xf32>
    %c16_149 = arith.constant 16 : index
    %c32_150 = arith.constant 32 : index
    %374 = vector.load %arg16[%c16_149, %c32_150] : memref<64x64xf32, #tpu.memory_space<vmem>>, vector<8x32xf32>
    tpu.vector_store %arg16[%c16_149, %c32_150], %373 {strides = array<i32>} : memref<64x64xf32, #tpu.memory_space<vmem>>, vector<8x32xf32>,
    %375 = arith.truncf %370 : vector<8x64xf32> to vector<8x64xbf16>
    %cst_151 = arith.constant dense<0.000000e+00> : vector<8x256xf32>
    %376 = tpu.matmul %375, %228, %cst_151 {dimension_numbers = #tpu.dot_dimension_numbers<[1], [0], [0], [1], [0, 0, 1, 1], [], []>} : vector<8x64xbf16>, vector<64x256xbf16>, vector<8x256xf32> -> vector<8x256xf32>
    %c48_152 = arith.constant 48 : index
    %c0_153 = arith.constant 0 : index
    %377 = vector.load %arg15[%c48_152, %c0_153] : memref<64x256xf32, #tpu.memory_space<vmem>>, vector<8x256xf32>
    %378 = arith.addf %376, %377 : vector<8x256xf32>
    %379 = vector.extract_strided_slice %378 {offsets = [0, 0], sizes = [8, 192], strides = [1, 1]} : vector<8x256xf32> to vector<8x192xf32>
    %380 = arith.negf %379 : vector<8x192xf32>
    %381 = math.exp %380 : vector<8x192xf32>
    %cst_154 = arith.constant 1.000000e+00 : f32
    %382 = vector.broadcast %cst_154 : f32 to vector<8x192xf32>
    %383 = arith.addf %382, %381 : vector<8x192xf32>
    %384 = arith.divf %382, %383 : vector<8x192xf32>
    %385 = vector.extract_strided_slice %378 {offsets = [0, 192], sizes = [8, 64], strides = [1, 1]} : vector<8x256xf32> to vector<8x64xf32>
    %386 = math.tanh %385 : vector<8x64xf32>
    %387 = vector.extract_strided_slice %384 {offsets = [0, 64], sizes = [8, 64], strides = [1, 1]} : vector<8x192xf32> to vector<8x64xf32>
    %388 = arith.mulf %387, %367 : vector<8x64xf32>
    %389 = vector.extract_strided_slice %384 {offsets = [0, 0], sizes = [8, 64], strides = [1, 1]} : vector<8x192xf32> to vector<8x64xf32>
    %390 = arith.mulf %389, %386 : vector<8x64xf32>
    %391 = arith.addf %388, %390 : vector<8x64xf32>
    %392 = vector.extract_strided_slice %384 {offsets = [0, 128], sizes = [8, 64], strides = [1, 1]} : vector<8x192xf32> to vector<8x64xf32>
    %393 = math.tanh %391 : vector<8x64xf32>
    %394 = arith.mulf %392, %393 : vector<8x64xf32>
    %395 = vector.extract_strided_slice %394 {offsets = [0, 0], sizes = [8, 32], strides = [1, 1]} : vector<8x64xf32> to vector<8x32xf32>
    %c48_155 = arith.constant 48 : index
    %c0_156 = arith.constant 0 : index
    %396 = vector.load %arg16[%c48_155, %c0_156] : memref<64x64xf32, #tpu.memory_space<vmem>>, vector<8x32xf32>
    tpu.vector_store %arg16[%c48_155, %c0_156], %395 {strides = array<i32>} : memref<64x64xf32, #tpu.memory_space<vmem>>, vector<8x32xf32>,
    %397 = vector.extract_strided_slice %394 {offsets = [0, 32], sizes = [8, 32], strides = [1, 1]} : vector<8x64xf32> to vector<8x32xf32>
    %c8_157 = arith.constant 8 : index
    %c32_158 = arith.constant 32 : index
    %398 = vector.load %arg16[%c8_157, %c32_158] : memref<64x64xf32, #tpu.memory_space<vmem>>, vector<8x32xf32>
    tpu.vector_store %arg16[%c8_157, %c32_158], %397 {strides = array<i32>} : memref<64x64xf32, #tpu.memory_space<vmem>>, vector<8x32xf32>,
    %399 = arith.truncf %394 : vector<8x64xf32> to vector<8x64xbf16>
    %cst_159 = arith.constant dense<0.000000e+00> : vector<8x256xf32>
    %400 = tpu.matmul %399, %228, %cst_159 {dimension_numbers = #tpu.dot_dimension_numbers<[1], [0], [0], [1], [0, 0, 1, 1], [], []>} : vector<8x64xbf16>, vector<64x256xbf16>, vector<8x256xf32> -> vector<8x256xf32>
    %c56_160 = arith.constant 56 : index
    %c0_161 = arith.constant 0 : index
    %401 = vector.load %arg15[%c56_160, %c0_161] : memref<64x256xf32, #tpu.memory_space<vmem>>, vector<8x256xf32>
    %402 = arith.addf %400, %401 : vector<8x256xf32>
    %403 = vector.extract_strided_slice %402 {offsets = [0, 0], sizes = [8, 192], strides = [1, 1]} : vector<8x256xf32> to vector<8x192xf32>
    %404 = arith.negf %403 : vector<8x192xf32>
    %405 = math.exp %404 : vector<8x192xf32>
    %cst_162 = arith.constant 1.000000e+00 : f32
    %406 = vector.broadcast %cst_162 : f32 to vector<8x192xf32>
    %407 = arith.addf %406, %405 : vector<8x192xf32>
    %408 = arith.divf %406, %407 : vector<8x192xf32>
    %409 = vector.extract_strided_slice %402 {offsets = [0, 192], sizes = [8, 64], strides = [1, 1]} : vector<8x256xf32> to vector<8x64xf32>
    %410 = math.tanh %409 : vector<8x64xf32>
    %411 = vector.extract_strided_slice %408 {offsets = [0, 64], sizes = [8, 64], strides = [1, 1]} : vector<8x192xf32> to vector<8x64xf32>
    %412 = arith.mulf %411, %391 : vector<8x64xf32>
    %413 = vector.extract_strided_slice %408 {offsets = [0, 0], sizes = [8, 64], strides = [1, 1]} : vector<8x192xf32> to vector<8x64xf32>
    %414 = arith.mulf %413, %410 : vector<8x64xf32>
    %415 = arith.addf %412, %414 : vector<8x64xf32>
    %416 = vector.extract_strided_slice %408 {offsets = [0, 128], sizes = [8, 64], strides = [1, 1]} : vector<8x192xf32> to vector<8x64xf32>
    %417 = math.tanh %415 : vector<8x64xf32>
    %418 = arith.mulf %416, %417 : vector<8x64xf32>
    %419 = vector.extract_strided_slice %418 {offsets = [0, 0], sizes = [8, 32], strides = [1, 1]} : vector<8x64xf32> to vector<8x32xf32>
    %c56_163 = arith.constant 56 : index
    %c0_164 = arith.constant 0 : index
    %420 = vector.load %arg16[%c56_163, %c0_164] : memref<64x64xf32, #tpu.memory_space<vmem>>, vector<8x32xf32>
    tpu.vector_store %arg16[%c56_163, %c0_164], %419 {strides = array<i32>} : memref<64x64xf32, #tpu.memory_space<vmem>>, vector<8x32xf32>,
    %421 = vector.extract_strided_slice %418 {offsets = [0, 32], sizes = [8, 32], strides = [1, 1]} : vector<8x64xf32> to vector<8x32xf32>
    %c0_165 = arith.constant 0 : index
    %c32_166 = arith.constant 32 : index
    %422 = vector.load %arg16[%c0_165, %c32_166] : memref<64x64xf32, #tpu.memory_space<vmem>>, vector<8x32xf32>
    tpu.vector_store %arg16[%c0_165, %c32_166], %421 {strides = array<i32>} : memref<64x64xf32, #tpu.memory_space<vmem>>, vector<8x32xf32>,
    %c0_167 = arith.constant 0 : index
    %c0_168 = arith.constant 0 : index
    %423 = vector.load %arg16[%c0_167, %c0_168] : memref<64x64xf32, #tpu.memory_space<vmem>>, vector<64x64xf32>
    %c0_169 = arith.constant 0 : index
    %c0_170 = arith.constant 0 : index
    %424 = vector.load %arg10[%c0_169, %c0_170] : memref<64x1xf32, #tpu.memory_space<vmem>>, vector<64x1xf32>
    %cst_171 = arith.constant dense<0.000000e+00> : vector<64x1xf32>
    %425 = tpu.matmul %423, %424, %cst_171 {dimension_numbers = #tpu.dot_dimension_numbers<[1], [0], [0], [1], [0, 0, 1, 1], [], []>} : vector<64x64xf32>, vector<64x1xf32>, vector<64x1xf32> -> vector<64x1xf32>
    %c0_172 = arith.constant 0 : index
    %c0_173 = arith.constant 0 : index
    %426 = vector.load %arg11[%c0_172, %c0_173] : memref<1x1xf32, #tpu.memory_space<vmem>>, vector<1x1xf32>
    %427 = vector.broadcast %426 : vector<1x1xf32> to vector<64x1xf32>
    %428 = arith.addf %425, %427 : vector<64x1xf32>
    %429 = arith.negf %428 : vector<64x1xf32>
    %430 = math.exp %429 : vector<64x1xf32>
    %cst_174 = arith.constant 1.000000e+00 : f32
    %431 = vector.broadcast %cst_174 : f32 to vector<64x1xf32>
    %432 = arith.addf %431, %430 : vector<64x1xf32>
    %433 = arith.divf %431, %432 : vector<64x1xf32>
    %c0_175 = arith.constant 0 : index
    %c0_176 = arith.constant 0 : index
    %434 = vector.load %arg12[%c0_175, %c0_176] : memref<64x1xf32, #tpu.memory_space<vmem>>, vector<64x1xf32>
    tpu.vector_store %arg12[%c0_175, %c0_176], %433 {strides = array<i32>} : memref<64x1xf32, #tpu.memory_space<vmem>>, vector<64x1xf32>,
    return
  }
}

</mosaic_0001>

<bundles_post_ra>
// kernel: tpu_custom_call.1
= control target key start
LH: loop header
LB: loop body
LE: loop exit
PB: predicated region body
PF: predicated region fallthrough
CT: control target
= control target key end

     0   :  { %s3411_s0 = inlined_call_operand.vmem [shape: f32[64,1], index: 0, kind: input, shape index: {}]   ;;  %s3412_s1 = inlined_call_operand.vmem [shape: f32[64,1], index: 1, kind: input, shape index: {}]   ;;  %s3413_s2 = inlined_call_operand.vmem [shape: f32[1,256], index: 2, kind: input, shape index: {}]   ;;  %s3414_s3 = inlined_call_operand.vmem [shape: f32[1,256], index: 3, kind: input, shape index: {}]   ;;  %s3415_s4 = inlined_call_operand.vmem [shape: f32[1,256], index: 4, kind: input, shape index: {}]   ;;  %s3416_s5 = inlined_call_operand.vmem [shape: bf16[64,256], index: 5, kind: input, shape index: {}]   ;;  %s3417_s6 = inlined_call_operand.vmem [shape: bf16[64,256], index: 6, kind: input, shape index: {}]   ;;  %s3418_s7 = inlined_call_operand.vmem [shape: bf16[64,256], index: 7, kind: input, shape index: {}]   ;;  %s3419_s8 = inlined_call_operand.vmem [shape: f32[1,256], index: 8, kind: input, shape index: {}]   ;;  %s3420_s9 = inlined_call_operand.hbm [shape: bf16[64,256], index: 9, kind: input, shape index: {}]   ;;  %s3421_s10 = inlined_call_operand.vmem [shape: f32[64,1], index: 10, kind: input, shape index: {}]   ;;  %s3422_s11 = inlined_call_operand.<no memory space> [shape: f32[1,1], index: 11, kind: input, shape index: {}]   ;;  %s3423_s12 = inlined_call_operand.vmem [shape: f32[64,1], index: 12, kind: output, shape index: {}]  }
   0x1   :  { %v17_v0 = vstv %s3422_s11 }
   0x2   :  { %18 = vst [vmem:[#allocation6] sm:$0x1] %v17_v0 }
   0x3   :  { %19 = vsyncpa [#allocation8], 0  ;;  %s2642_s23 = smov [#allocation7]   ;;  %s2618_s27 = scalar_lea.hbm %s3420_s9, 1024 }
   0x4   :  { %s43_s24 = sshll.u32 %s2642_s23, 4  ;;  %p2619_p0 = scmp.ne.s32.totalorder %s3420_s9, %s2618_s27  ;;  %s44_s24 = int_to_ptr.vmem [resolvable:$true] %s43_s24 }
   0x5   :  { %p2622_p1 = scmp.lt.u32.totalorder %s2618_s27, %s3420_s9 }
   0x7   :  { %p2624_p2 = pnand %p2622_p1, %p2619_p0 }
   0x9   :  { %2627 = shalt.err (!%p2624_p2)
}
   0xa   :  { %s2628_s11 = scalar_lea.vmem %s44_s24, 1024  ;;  %p2633_p4 = scmp.lt.s32.totalorder %s44_s24, %s44_s24 }
   0xb   :  { %p2629_p3 = scmp.ne.s32.totalorder %s44_s24, %s2628_s11  ;;  %p2634_p5 = scmp.lt.s32.totalorder %s2628_s11, %s2628_s11 }
   0xd   :  { %p2635_p6 = por %p2634_p5, %p2633_p4 }
   0xf   :  { %p2636_p7 = pnand %p2635_p6, %p2629_p3 }
  0x11   :  { %2639 = shalt.err (!%p2636_p7)
}
  0x12   :  { %s2643_s14 = smov 128   ;;  %s2644_s15 = smov 8  }
  0x13   :  { %49 = dma.hbm_to_vmem [thread:$0]  %s3420_s9, 1024, %s44_s24, [#allocation8], %s2643_s14, %s2643_s14, %s2644_s15  }
  0x14   :  { %2640 = dma.done.wait [#allocation8], 1024  }
  0x15   :  { %2641 = vsyncadd [#allocation8], 4294966272  ;;  %v2645_v1 = vmov 0   ;;  %v2734_v2 = vld [vmem:[%s3416_s5 + $0x4] ss:$8 sps:$4 sm:$0xff]   ;;  %v108_v12 = vlaneseq  ;;  %vm320_vm0 = vcmask 523264  }
  0x16   :  { %356 = vmatprep.mubr.bf16.mxu1 %v2645_v1  ;;  %2344 = vset.pattern.permute.xlu0 %v2645_v1  ;;  %v2739_v3 = vld [vmem:[%s3416_s5] ss:$8 sps:$4 sm:$0xff]   ;;  %v2745_v4 = vld [vmem:[%s3416_s5 + $0x14] ss:$8 sps:$4 sm:$0xff]   ;;  %v2752_v5 = vld [vmem:[%s3416_s5 + $0x10] ss:$8 sps:$4 sm:$0xff]  }
  0x17   :  { %2345 = vset.pattern.permute.xlu1 %v2645_v1  ;;  %512 = vmatprep.mubr.bf16.mxu0 %v2645_v1  ;;  %v2759_v6 = vld [vmem:[%s3416_s5 + $0x24] ss:$8 sps:$4 sm:$0xff]   ;;  %v2765_v7 = vld [vmem:[%s3416_s5 + $0x20] ss:$8 sps:$4 sm:$0xff]   ;;  %v2773_v9 = vld [vmem:[%s3416_s5 + $0x34] ss:$8 sps:$4 sm:$0xff]  }
  0x18   :  { %324 = vmatprep.subr.bf16.mxu1 %v2734_v2  ;;  %480 = vmatprep.subr.bf16.mxu0 %v2734_v2  ;;  %v58_v8 = vld [vmem:[%s3411_s0] sm:$0xff]  ;;  %v2784_v11 = vld [vmem:[%s3416_s5 + $0x30] ss:$8 sps:$4 sm:$0xff]   ;;  %v109_v13 = vshrl.u32 %v108_v12, 7  ;;  %v59_v48 = vld [vmem:[%s3411_s0 + $0x8] sm:$0xff]  ;;  %vm1405_vm1 = vcmask 261120  }
  0x19   :  { %325 = vmatpush1.bf16.msra.mxu1 %v2739_v3  ;;  %481 = vmatpush1.bf16.msra.mxu0 %v2739_v3  ;;  %v134_v10 = vld [vmem:[%s3412_s1] sm:$0xff]  ;;  %v135_v53 = vld [vmem:[%s3412_s1 + $0x8] sm:$0xff]  ;;  %vm1407_vm2 = vcmask 523520   ;;  %vm2162_vm3 = vcmask 7168  }
  0x1a   :  { %326 = vmatprep.subr.bf16.mxu1 %v2745_v4  ;;  %482 = vmatprep.subr.bf16.mxu0 %v2745_v4  ;;  %v2805_v15 = vsub.s32 0, %v109_v13  ;;  %v66_v16 = vld [vmem:[%s3413_s2] sm:$0x3]  ;;  %v2810_v17 = vsub.s32 1, %v109_v13 }
  0x1b   :  { %69 = vperm.xlu0 %2344, %v58_v8   ;;  %v142_v18 = vld [vmem:[%s3414_s3] sm:$0x3] }
  0x1c   :  { %v2816_v19 = vrot.slane %v66_v16, %v2805_v15  ;;  %v2819_v20 = vrot.slane %v142_v18, %v2805_v15  ;;  %v2822_v21 = vrot.slane %v66_v16, %v2810_v17  ;;  %v2825_v22 = vrot.slane %v142_v18, %v2810_v17  ;;  %v226_v28 = vld [vmem:[%s3415_s4] sm:$0x3]  ;;  %s2646_s4 = smov 64  }
  0x1d   :  { %327 = vmatpush1.bf16.msra.mxu1 %v2752_v5  ;;  %483 = vmatpush1.bf16.msra.mxu0 %v2752_v5  ;;  %v2835_v30 = vrot.slane %v226_v28, %v2805_v15  ;;  %v2838_v32 = vrot.slane %v226_v28, %v2810_v17 }
  0x1e   :  { %328 = vmatprep.subr.bf16.mxu1 %v2759_v6  ;;  %484 = vmatprep.subr.bf16.mxu0 %v2759_v6 }
  0x1f   :  { %145 = vperm.xlu0 %2344, %v134_v10  }
  0x21   :  { %329 = vmatpush1.bf16.msra.mxu1 %v2765_v7  ;;  %485 = vmatpush1.bf16.msra.mxu0 %v2765_v7 }
  0x22   :  { %330 = vmatprep.subr.bf16.mxu1 %v2773_v9  ;;  %486 = vmatprep.subr.bf16.mxu0 %v2773_v9 }
  0x25   :  { %331 = vmatpush1.bf16.msra.mxu1 %v2784_v11  ;;  %487 = vmatpush1.bf16.msra.mxu0 %v2784_v11 }
  0x26   :  { %402 = vmatprep.subr.bf16.mxu1 %v2734_v2  ;;  %636 = vmatprep.subr.bf16.mxu0 %v2734_v2 }
  0x28   :  { %357 = vmatmul.mubr.bf16.vlgmr.msra.gmra.mrb[0].mxu1 %v2645_v1 }
  0x29   :  { %403 = vmatpush1.bf16.msra.mxu1 %v2739_v3  ;;  %434 = vmatprep.mubr.bf16.mxu1 %v2645_v1 }
  0x2a   :  { %404 = vmatprep.subr.bf16.mxu1 %v2745_v4 }
  0x2d   :  { %405 = vmatpush1.bf16.msra.mxu1 %v2752_v5 }
  0x2e   :  { %406 = vmatprep.subr.bf16.mxu1 %v2759_v6 }
  0x31   :  { %407 = vmatpush1.bf16.msra.mxu1 %v2765_v7 }
  0x32   :  { %408 = vmatprep.subr.bf16.mxu1 %v2773_v9 }
  0x35   :  { %409 = vmatpush1.bf16.msra.mxu1 %v2784_v11 }
  0x36   :  { %558 = vmatprep.subr.bf16.mxu1 %v2734_v2 }
  0x9a   :  { %v70_v14 = vpop.permute.xlu0 %69 }
  0x9b   :  { %v118_v24 = vmul.f32 %v2816_v19, %v70_v14  ;;  %v119_v26 = vmul.f32 %v2822_v21, %v70_v14 }
  0x9e   :  { %v146_v23 = vpop.permute.xlu0 %145 }
  0x9f   :  { %v194_v25 = vmul.f32 %v2819_v20, %v146_v23  ;;  %v195_v27 = vmul.f32 %v2825_v22, %v146_v23 }
  0xa1   :  { %v210_v29 = vadd.f32 %v194_v25, %v118_v24  ;;  %v211_v31 = vadd.f32 %v195_v27, %v119_v26 }
  0xa3   :  { %v238_v33 = vadd.f32 %v2835_v30, %v210_v29  ;;  %v239_v35 = vadd.f32 %v2838_v32, %v211_v31 }
  0xfb   :  { %v358_v34 = vpop.f32.mrb[0].mxu1 }
  0xfc   :  { %v359_v36 = vadd.f32 %v358_v34, %v238_v33  ;;  %v360_v37 = vpop.f32.mrb[1].mxu1 }
  0xfd   :  { %v361_v38 = vadd.f32 %v360_v37, %v239_v35  ;;  %v362_v39 = vpop.f32.mrb[2].mxu1  ;;  %v60_v37 = vld [vmem:[%s3411_s0 + $0x10] sm:$0xff] }
  0xfe   :  { %v363_v40 = vpop.f32.mrb[3].mxu1  ;;  %v2184_v42 = vmul.f32 -1.442695, %v359_v36 }
  0xff   :  { %2394 = vtanh.f32 %v361_v38  ;;  %v2185_v54 = vmul.f32 -1.442695, %v361_v38 }
 0x100   :  { %2396 = vpow2.f32 %v2184_v42  ;;  %v136_v42 = vld [vmem:[%s3412_s1 + $0x10] sm:$0xff] }
 0x109   :  { %v2395_v41 = vpop.eup %2394 }
 0x10a   :  { %380 = vrot.lane.b32.xlu1 %v2395_v41, %s2646_s4  ;;  %v2397_v43 = vpop.eup %2396 }
 0x10b   :  { %v371_v44 = vadd.f32 1.0, %v2397_v43 }
 0x10d   :  { %2398 = vrcp.f32 %v371_v44 }
 0x117   :  { %v2399_v45 = vpop.eup %2398 }
 0x118   :  { %v378_v49 = vmul.f32 0.0, %v2399_v45 }
 0x17c   :  { %v381_v46 = vpop.permute.xlu1 %380 }
 0x17d   :  { %v383_v47 = vmul.f32 %v2399_v45, %v381_v46 }
 0x17f   :  { %385 = vrot.lane.b32.xlu1 %v383_v47, %s2646_s4 }
 0x183   :  { %74 = vperm.xlu1 %2345, %v59_v48  }
 0x1f1   :  { %v386_v50 = vpop.permute.xlu1 %385 }
 0x1f2   :  { %v388_v51 = vadd.f32 %v386_v50, %v378_v49 }
 0x1f4   :  { %2400 = vtanh.f32 %v388_v51 }
 0x1f5   :  { %2402 = vpow2.f32 %v2185_v54 }
 0x1fe   :  { %v2401_v52 = vpop.eup %2400 }
 0x1ff   :  { %391 = vrot.lane.b32.xlu0 %v2401_v52, %s2646_s4  ;;  %v2403_v55 = vpop.eup %2402 }
 0x200   :  { %v372_v56 = vadd.f32 1.0, %v2403_v55 }
 0x202   :  { %2404 = vrcp.f32 %v372_v56  ;;  %v75_v61 = vpop.permute.xlu1 %74 }
 0x203   :  { %150 = vperm.xlu0 %2344, %v135_v53   ;;  %v121_v63 = vmul.f32 %v2822_v21, %v75_v61  ;;  %v120_v24 = vmul.f32 %v2816_v19, %v75_v61 }
 0x20c   :  { %v2405_v57 = vpop.eup %2404 }
 0x271   :  { %v392_v58 = vpop.permute.xlu0 %391 }
 0x272   :  { %v394_v59 = vmul.f32 %v2405_v57, %v392_v58 }
 0x274   :  { %395 = vst.msk [vmem:[#allocation3] sm:$0xff] %vm320_vm0, %v394_v59  ;;  %v396_v60 = vpack.c.bf16 %v394_v59, %v394_v59 }
 0x276   :  { %2186 = vmatmul.mubr.msk.bf16.vlgmr.msra.gmra.mrb[4].mxu1 %vm320_vm0, %v396_v60 }
 0x277   :  { %559 = vmatpush1.bf16.msra.mxu1 %v2739_v3  ;;  %590 = vmatprep.mubr.bf16.mxu1 %v2645_v1 }
 0x278   :  { %560 = vmatprep.subr.bf16.mxu1 %v2745_v4 }
 0x27b   :  { %561 = vmatpush1.bf16.msra.mxu1 %v2752_v5 }
 0x27c   :  { %562 = vmatprep.subr.bf16.mxu1 %v2759_v6 }
 0x27f   :  { %563 = vmatpush1.bf16.msra.mxu1 %v2765_v7 }
 0x280   :  { %564 = vmatprep.subr.bf16.mxu1 %v2773_v9 }
 0x282   :  { %v151_v62 = vpop.permute.xlu0 %150 }
 0x283   :  { %565 = vmatpush1.bf16.msra.mxu1 %v2784_v11  ;;  %v197_v0 = vmul.f32 %v2825_v22, %v151_v62  ;;  %v196_v25 = vmul.f32 %v2819_v20, %v151_v62 }
 0x284   :  { %714 = vmatprep.subr.bf16.mxu1 %v2734_v2 }
 0x285   :  { %v213_v8 = vadd.f32 %v197_v0, %v121_v63  ;;  %v212_v26 = vadd.f32 %v196_v25, %v120_v24  ;;  %v61_v24 = vld [vmem:[%s3411_s0 + $0x18] sm:$0xff] }
 0x287   :  { %v241_v12 = vadd.f32 %v2838_v32, %v213_v8  ;;  %v240_v27 = vadd.f32 %v2835_v30, %v212_v26 }
 0x349   :  { %v436_v10 = vpop.f32.mrb[4].mxu1 }
 0x34a   :  { %v438_v13 = vpop.f32.mrb[5].mxu1  ;;  %v437_v28 = vadd.f32 %v436_v10, %v240_v27 }
 0x34b   :  { %v439_v14 = vadd.f32 %v438_v13, %v241_v12  ;;  %v440_v16 = vpop.f32.mrb[6].mxu1 }
 0x34c   :  { %v441_v18 = vpop.f32.mrb[7].mxu1  ;;  %v2187_v29 = vmul.f32 -1.442695, %v437_v28 }
 0x34d   :  { %2406 = vtanh.f32 %v439_v14  ;;  %v2188_v43 = vmul.f32 -1.442695, %v439_v14 }
 0x34e   :  { %2408 = vpow2.f32 %v2187_v29  ;;  %v137_v29 = vld [vmem:[%s3412_s1 + $0x18] sm:$0xff] }
 0x357   :  { %v2407_v23 = vpop.eup %2406 }
 0x358   :  { %458 = vrot.lane.b32.xlu1 %v2407_v23, %s2646_s4  ;;  %v2409_v31 = vpop.eup %2408 }
 0x359   :  { %v449_v33 = vadd.f32 1.0, %v2409_v31 }
 0x35b   :  { %2410 = vrcp.f32 %v449_v33 }
 0x365   :  { %v2411_v34 = vpop.eup %2410 }
 0x366   :  { %v456_v38 = vmul.f32 %v2411_v34, %v388_v51 }
 0x3ca   :  { %v459_v35 = vpop.permute.xlu1 %458 }
 0x3cb   :  { %v461_v36 = vmul.f32 %v2411_v34, %v459_v35 }
 0x3cd   :  { %463 = vrot.lane.b32.xlu0 %v461_v36, %s2646_s4 }
 0x3d1   :  { %79 = vperm.xlu0 %2344, %v60_v37  }
 0x43f   :  { %v464_v39 = vpop.permute.xlu0 %463 }
 0x440   :  { %v466_v40 = vadd.f32 %v464_v39, %v456_v38 }
 0x442   :  { %2412 = vtanh.f32 %v466_v40 }
 0x443   :  { %2414 = vpow2.f32 %v2188_v43 }
 0x44c   :  { %v2413_v41 = vpop.eup %2412 }
 0x44d   :  { %469 = vrot.lane.b32.xlu1 %v2413_v41, %s2646_s4  ;;  %v2415_v44 = vpop.eup %2414 }
 0x44e   :  { %v450_v45 = vadd.f32 1.0, %v2415_v44 }
 0x450   :  { %2416 = vrcp.f32 %v450_v45  ;;  %v80_v51 = vpop.permute.xlu0 %79 }
 0x451   :  { %155 = vperm.xlu1 %2345, %v136_v42   ;;  %v123_v53 = vmul.f32 %v2822_v21, %v80_v51  ;;  %v122_v63 = vmul.f32 %v2816_v19, %v80_v51 }
 0x45a   :  { %v2417_v46 = vpop.eup %2416 }
 0x4bf   :  { %v470_v47 = vpop.permute.xlu1 %469 }
 0x4c0   :  { %v472_v48 = vmul.f32 %v2417_v46, %v470_v47 }
 0x4c2   :  { %473 = vst.msk [vmem:[#allocation3 + $0x8] sm:$0xff] %vm320_vm0, %v472_v48  ;;  %v474_v49 = vpack.c.bf16 %v472_v48, %v472_v48 }
 0x4c4   :  { %2189 = vmatmul.mubr.msk.bf16.vlgmr.msra.gmra.mrb[0].mxu0 %vm320_vm0, %v474_v49 }
 0x4c5   :  { %637 = vmatpush1.bf16.msra.mxu0 %v2739_v3  ;;  %668 = vmatprep.mubr.bf16.mxu0 %v2645_v1 }
 0x4c6   :  { %638 = vmatprep.subr.bf16.mxu0 %v2745_v4 }
 0x4c9   :  { %639 = vmatpush1.bf16.msra.mxu0 %v2752_v5 }
 0x4ca   :  { %640 = vmatprep.subr.bf16.mxu0 %v2759_v6 }
 0x4cd   :  { %641 = vmatpush1.bf16.msra.mxu0 %v2765_v7 }
 0x4ce   :  { %642 = vmatprep.subr.bf16.mxu0 %v2773_v9 }
 0x4d0   :  { %v156_v50 = vpop.permute.xlu1 %155 }
 0x4d1   :  { %643 = vmatpush1.bf16.msra.mxu0 %v2784_v11  ;;  %v199_v52 = vmul.f32 %v2825_v22, %v156_v50  ;;  %v198_v62 = vmul.f32 %v2819_v20, %v156_v50 }
 0x4d2   :  { %792 = vmatprep.subr.bf16.mxu0 %v2734_v2 }
 0x4d3   :  { %v215_v54 = vadd.f32 %v199_v52, %v123_v53  ;;  %v214_v0 = vadd.f32 %v198_v62, %v122_v63 }
 0x4d5   :  { %v243_v56 = vadd.f32 %v2838_v32, %v215_v54  ;;  %v242_v8 = vadd.f32 %v2835_v30, %v214_v0 }
 0x597   :  { %v514_v55 = vpop.f32.mrb[0].mxu0 }
 0x598   :  { %v516_v57 = vpop.f32.mrb[1].mxu0  ;;  %v515_v10 = vadd.f32 %v514_v55, %v242_v8 }
 0x599   :  { %v517_v58 = vadd.f32 %v516_v57, %v243_v56  ;;  %v518_v59 = vpop.f32.mrb[2].mxu0 }
 0x59a   :  { %v519_v60 = vpop.f32.mrb[3].mxu0  ;;  %v2190_v12 = vmul.f32 -1.442695, %v515_v10  ;;  %v138_v10 = vld [vmem:[%s3412_s1 + $0x20] sm:$0xff] }
 0x59b   :  { %2418 = vtanh.f32 %v517_v58  ;;  %v2191_v31 = vmul.f32 -1.442695, %v517_v58 }
 0x59c   :  { %2420 = vpow2.f32 %v2190_v12 }
 0x5a5   :  { %v2419_v61 = vpop.eup %2418 }
 0x5a6   :  { %536 = vrot.lane.b32.xlu0 %v2419_v61, %s2646_s4  ;;  %v2421_v13 = vpop.eup %2420  ;;  %v62_v61 = vld [vmem:[%s3411_s0 + $0x20] sm:$0xff] }
 0x5a7   :  { %v527_v14 = vadd.f32 1.0, %v2421_v13 }
 0x5a9   :  { %2422 = vrcp.f32 %v527_v14 }
 0x5b3   :  { %v2423_v16 = vpop.eup %2422 }
 0x5b4   :  { %v534_v25 = vmul.f32 %v2423_v16, %v466_v40 }
 0x618   :  { %v537_v18 = vpop.permute.xlu0 %536 }
 0x619   :  { %v539_v23 = vmul.f32 %v2423_v16, %v537_v18 }
 0x61b   :  { %541 = vrot.lane.b32.xlu1 %v539_v23, %s2646_s4 }
 0x61f   :  { %84 = vperm.xlu1 %2345, %v61_v24  }
 0x68d   :  { %v542_v26 = vpop.permute.xlu1 %541 }
 0x68e   :  { %v544_v27 = vadd.f32 %v542_v26, %v534_v25 }
 0x690   :  { %2424 = vtanh.f32 %v544_v27 }
 0x691   :  { %2426 = vpow2.f32 %v2191_v31 }
 0x69a   :  { %v2425_v28 = vpop.eup %2424 }
 0x69b   :  { %547 = vrot.lane.b32.xlu0 %v2425_v28, %s2646_s4  ;;  %v2427_v33 = vpop.eup %2426 }
 0x69c   :  { %v528_v34 = vadd.f32 1.0, %v2427_v33 }
 0x69e   :  { %2428 = vrcp.f32 %v528_v34  ;;  %v85_v40 = vpop.permute.xlu1 %84 }
 0x69f   :  { %160 = vperm.xlu0 %2344, %v137_v29   ;;  %v125_v42 = vmul.f32 %v2822_v21, %v85_v40  ;;  %v124_v51 = vmul.f32 %v2816_v19, %v85_v40 }
 0x6a8   :  { %v2429_v35 = vpop.eup %2428 }
 0x70d   :  { %v548_v36 = vpop.permute.xlu0 %547 }
 0x70e   :  { %v550_v37 = vmul.f32 %v2429_v35, %v548_v36 }
 0x710   :  { %551 = vst.msk [vmem:[#allocation3 + $0x10] sm:$0xff] %vm320_vm0, %v550_v37  ;;  %v552_v38 = vpack.c.bf16 %v550_v37, %v550_v37 }
 0x712   :  { %2192 = vmatmul.mubr.msk.bf16.vlgmr.msra.gmra.mrb[8].mxu1 %vm320_vm0, %v552_v38 }
 0x713   :  { %715 = vmatpush1.bf16.msra.mxu1 %v2739_v3  ;;  %746 = vmatprep.mubr.bf16.mxu1 %v2645_v1 }
 0x714   :  { %716 = vmatprep.subr.bf16.mxu1 %v2745_v4 }
 0x717   :  { %717 = vmatpush1.bf16.msra.mxu1 %v2752_v5 }
 0x718   :  { %718 = vmatprep.subr.bf16.mxu1 %v2759_v6 }
 0x71b   :  { %719 = vmatpush1.bf16.msra.mxu1 %v2765_v7 }
 0x71c   :  { %720 = vmatprep.subr.bf16.mxu1 %v2773_v9 }
 0x71e   :  { %v161_v39 = vpop.permute.xlu0 %160 }
 0x71f   :  { %721 = vmatpush1.bf16.msra.mxu1 %v2784_v11  ;;  %v201_v41 = vmul.f32 %v2825_v22, %v161_v39 }
 0x720   :  { %870 = vmatprep.subr.bf16.mxu1 %v2734_v2  ;;  %v200_v2 = vmul.f32 %v2819_v20, %v161_v39 }
 0x721   :  { %v217_v43 = vadd.f32 %v201_v41, %v125_v42 }
 0x722   :  { %v216_v52 = vadd.f32 %v200_v2, %v124_v51 }
 0x723   :  { %v245_v45 = vadd.f32 %v2838_v32, %v217_v43 }
 0x724   :  { %v244_v53 = vadd.f32 %v2835_v30, %v216_v52 }
 0x7e5   :  { %v592_v44 = vpop.f32.mrb[8].mxu1 }
 0x7e6   :  { %v594_v46 = vpop.f32.mrb[9].mxu1  ;;  %v593_v54 = vadd.f32 %v592_v44, %v244_v53 }
 0x7e7   :  { %v595_v47 = vadd.f32 %v594_v46, %v245_v45  ;;  %v596_v48 = vpop.f32.mrb[10].mxu1 }
 0x7e8   :  { %v597_v49 = vpop.f32.mrb[11].mxu1  ;;  %v2193_v55 = vmul.f32 -1.442695, %v593_v54  ;;  %v139_v54 = vld [vmem:[%s3412_s1 + $0x28] sm:$0xff] }
 0x7e9   :  { %2430 = vtanh.f32 %v595_v47  ;;  %v2194_v12 = vmul.f32 -1.442695, %v595_v47 }
 0x7ea   :  { %2432 = vpow2.f32 %v2193_v55 }
 0x7f3   :  { %v2431_v50 = vpop.eup %2430 }
 0x7f4   :  { %614 = vrot.lane.b32.xlu1 %v2431_v50, %s2646_s4  ;;  %v2433_v56 = vpop.eup %2432  ;;  %v63_v50 = vld [vmem:[%s3411_s0 + $0x28] sm:$0xff] }
 0x7f5   :  { %v605_v57 = vadd.f32 1.0, %v2433_v56 }
 0x7f7   :  { %2434 = vrcp.f32 %v605_v57 }
 0x801   :  { %v2435_v58 = vpop.eup %2434 }
 0x802   :  { %v612_v62 = vmul.f32 %v2435_v58, %v544_v27 }
 0x866   :  { %v615_v59 = vpop.permute.xlu1 %614 }
 0x867   :  { %v617_v60 = vmul.f32 %v2435_v58, %v615_v59 }
 0x869   :  { %619 = vrot.lane.b32.xlu0 %v617_v60, %s2646_s4 }
 0x86d   :  { %89 = vperm.xlu0 %2344, %v62_v61  }
 0x8db   :  { %v620_v63 = vpop.permute.xlu0 %619 }
 0x8dc   :  { %v622_v0 = vadd.f32 %v620_v63, %v612_v62 }
 0x8de   :  { %2436 = vtanh.f32 %v622_v0 }
 0x8df   :  { %2438 = vpow2.f32 %v2194_v12 }
 0x8e8   :  { %v2437_v8 = vpop.eup %2436 }
 0x8e9   :  { %625 = vrot.lane.b32.xlu1 %v2437_v8, %s2646_s4  ;;  %v2439_v13 = vpop.eup %2438 }
 0x8ea   :  { %v606_v14 = vadd.f32 1.0, %v2439_v13 }
 0x8ec   :  { %2440 = vrcp.f32 %v606_v14  ;;  %v90_v26 = vpop.permute.xlu0 %89 }
 0x8ed   :  { %165 = vperm.xlu1 %2345, %v138_v10   ;;  %v127_v28 = vmul.f32 %v2822_v21, %v90_v26  ;;  %v126_v40 = vmul.f32 %v2816_v19, %v90_v26 }
 0x8f6   :  { %v2441_v16 = vpop.eup %2440 }
 0x95b   :  { %v626_v18 = vpop.permute.xlu1 %625 }
 0x95c   :  { %v628_v23 = vmul.f32 %v2441_v16, %v626_v18 }
 0x95e   :  { %629 = vst.msk [vmem:[#allocation3 + $0x18] sm:$0xff] %vm320_vm0, %v628_v23  ;;  %v630_v24 = vpack.c.bf16 %v628_v23, %v628_v23 }
 0x960   :  { %2195 = vmatmul.mubr.msk.bf16.vlgmr.msra.gmra.mrb[4].mxu0 %vm320_vm0, %v630_v24 }
 0x961   :  { %793 = vmatpush1.bf16.msra.mxu0 %v2739_v3  ;;  %824 = vmatprep.mubr.bf16.mxu0 %v2645_v1 }
 0x962   :  { %794 = vmatprep.subr.bf16.mxu0 %v2745_v4 }
 0x965   :  { %795 = vmatpush1.bf16.msra.mxu0 %v2752_v5 }
 0x966   :  { %796 = vmatprep.subr.bf16.mxu0 %v2759_v6 }
 0x969   :  { %797 = vmatpush1.bf16.msra.mxu0 %v2765_v7 }
 0x96a   :  { %798 = vmatprep.subr.bf16.mxu0 %v2773_v9 }
 0x96c   :  { %v166_v25 = vpop.permute.xlu1 %165 }
 0x96d   :  { %799 = vmatpush1.bf16.msra.mxu0 %v2784_v11  ;;  %v203_v27 = vmul.f32 %v2825_v22, %v166_v25  ;;  %v202_v39 = vmul.f32 %v2819_v20, %v166_v25 }
 0x96f   :  { %v219_v29 = vadd.f32 %v203_v27, %v127_v28  ;;  %v218_v41 = vadd.f32 %v202_v39, %v126_v40 }
 0x971   :  { %v247_v33 = vadd.f32 %v2838_v32, %v219_v29  ;;  %v246_v42 = vadd.f32 %v2835_v30, %v218_v41  ;;  %v64_v29 = vld [vmem:[%s3411_s0 + $0x30] sm:$0xff] }
 0xa33   :  { %v670_v31 = vpop.f32.mrb[4].mxu0 }
 0xa34   :  { %v672_v34 = vpop.f32.mrb[5].mxu0  ;;  %v671_v43 = vadd.f32 %v670_v31, %v246_v42 }
 0xa35   :  { %v673_v35 = vadd.f32 %v672_v34, %v247_v33  ;;  %v674_v36 = vpop.f32.mrb[6].mxu0 }
 0xa36   :  { %v675_v37 = vpop.f32.mrb[7].mxu0  ;;  %v2196_v44 = vmul.f32 -1.442695, %v671_v43 }
 0xa37   :  { %2442 = vtanh.f32 %v673_v35  ;;  %v2197_v55 = vmul.f32 -1.442695, %v673_v35  ;;  %v2360_v35 = vld [vmem:[%s3417_s6 + $0x4] ss:$8 sps:$4 sm:$0xff]   ;;  %v140_v37 = vld [vmem:[%s3412_s1 + $0x30] sm:$0xff] }
 0xa38   :  { %2444 = vpow2.f32 %v2196_v44  ;;  %1026 = vmatprep.subr.bf16.mxu0 %v2360_v35  ;;  %v2358_v44 = vld [vmem:[%s3417_s6] ss:$8 sps:$4 sm:$0xff]  }
 0xa41   :  { %v2443_v38 = vpop.eup %2442 }
 0xa42   :  { %692 = vrot.lane.b32.xlu0 %v2443_v38, %s2646_s4  ;;  %v2445_v45 = vpop.eup %2444 }
 0xa43   :  { %v683_v46 = vadd.f32 1.0, %v2445_v45 }
 0xa45   :  { %2446 = vrcp.f32 %v683_v46  ;;  %v2363_v46 = vld [vmem:[%s3417_s6 + $0x14] ss:$8 sps:$4 sm:$0xff]  }
 0xa4f   :  { %v2447_v47 = vpop.eup %2446 }
 0xa50   :  { %v690_v2 = vmul.f32 %v2447_v47, %v622_v0 }
 0xab4   :  { %v693_v48 = vpop.permute.xlu0 %692 }
 0xab5   :  { %v695_v49 = vmul.f32 %v2447_v47, %v693_v48  ;;  %v2361_v47 = vld [vmem:[%s3417_s6 + $0x10] ss:$8 sps:$4 sm:$0xff]   ;;  %v2366_v48 = vld [vmem:[%s3417_s6 + $0x24] ss:$8 sps:$4 sm:$0xff]  }
 0xab7   :  { %697 = vrot.lane.b32.xlu1 %v695_v49, %s2646_s4  ;;  %v2364_v49 = vld [vmem:[%s3417_s6 + $0x20] ss:$8 sps:$4 sm:$0xff]  }
 0xabb   :  { %94 = vperm.xlu1 %2345, %v63_v50   ;;  %v2369_v50 = vld [vmem:[%s3417_s6 + $0x34] ss:$8 sps:$4 sm:$0xff]  }
 0xb29   :  { %v698_v51 = vpop.permute.xlu1 %697 }
 0xb2a   :  { %v700_v52 = vadd.f32 %v698_v51, %v690_v2  ;;  %v2367_v2 = vld [vmem:[%s3417_s6 + $0x30] ss:$8 sps:$4 sm:$0xff]   ;;  %v943_v51 = vld [vmem:[#allocation3 + $0x8] sm:$0xff] }
 0xb2c   :  { %2448 = vtanh.f32 %v700_v52 }
 0xb2d   :  { %2450 = vpow2.f32 %v2197_v55  ;;  %v944_v55 = vld [vmem:[#allocation3 + $0x10] sm:$0xff] }
 0xb36   :  { %v2449_v53 = vpop.eup %2448 }
 0xb37   :  { %703 = vrot.lane.b32.xlu0 %v2449_v53, %s2646_s4  ;;  %v2451_v56 = vpop.eup %2450 }
 0xb38   :  { %v684_v57 = vadd.f32 1.0, %v2451_v56 }
 0xb3a   :  { %2452 = vrcp.f32 %v684_v57  ;;  %v95_v63 = vpop.permute.xlu1 %94 }
 0xb3b   :  { %170 = vperm.xlu0 %2344, %v139_v54   ;;  %v945_v54 = vld [vmem:[#allocation3 + $0x18] sm:$0xff] }
 0xb3c   :  { %v3014_v56 = vpack.c.bf16 %v945_v54, %v944_v55  ;;  %v2370_v54 = vld [vmem:[%s3418_s7] ss:$8 sps:$4 sm:$0xff]  }
 0xb44   :  { %v2453_v58 = vpop.eup %2452 }
 0xba9   :  { %v704_v59 = vpop.permute.xlu0 %703 }
 0xbaa   :  { %v706_v60 = vmul.f32 %v2453_v58, %v704_v59 }
 0xbac   :  { %707 = vst.msk [vmem:[#allocation3 + $0x20] sm:$0xff] %vm320_vm0, %v706_v60  ;;  %v708_v61 = vpack.c.bf16 %v706_v60, %v706_v60 }
 0xbae   :  { %2198 = vmatmul.mubr.msk.bf16.vlgmr.msra.gmra.mrb[12].mxu1 %vm320_vm0, %v708_v61 }
 0xbaf   :  { %871 = vmatpush1.bf16.msra.mxu1 %v2739_v3  ;;  %902 = vmatprep.mubr.bf16.mxu1 %v2645_v1  ;;  %v129_v3 = vmul.f32 %v2822_v21, %v95_v63 }
 0xbb0   :  { %872 = vmatprep.subr.bf16.mxu1 %v2745_v4 }
 0xbb3   :  { %873 = vmatpush1.bf16.msra.mxu1 %v2752_v5  ;;  %v946_v58 = vld [vmem:[#allocation3 + $0x20] sm:$0xff] }
 0xbb4   :  { %874 = vmatprep.subr.bf16.mxu1 %v2759_v6 }
 0xbb7   :  { %875 = vmatpush1.bf16.msra.mxu1 %v2765_v7 }
 0xbb8   :  { %876 = vmatprep.subr.bf16.mxu1 %v2773_v9 }
 0xbba   :  { %v171_v62 = vpop.permute.xlu0 %170 }
 0xbbb   :  { %877 = vmatpush1.bf16.msra.mxu1 %v2784_v11  ;;  %v205_v0 = vmul.f32 %v2825_v22, %v171_v62  ;;  %v204_v9 = vmul.f32 %v2819_v20, %v171_v62  ;;  %v128_v11 = vmul.f32 %v2816_v19, %v95_v63 }
 0xbbd   :  { %v221_v8 = vadd.f32 %v205_v0, %v129_v3  ;;  %v220_v14 = vadd.f32 %v204_v9, %v128_v11 }
 0xbbf   :  { %v249_v4 = vadd.f32 %v2838_v32, %v221_v8  ;;  %v248_v16 = vadd.f32 %v2835_v30, %v220_v14 }
 0xc81   :  { %v748_v10 = vpop.f32.mrb[12].mxu1 }
 0xc82   :  { %v750_v12 = vpop.f32.mrb[13].mxu1  ;;  %v749_v18 = vadd.f32 %v748_v10, %v248_v16 }
 0xc83   :  { %v751_v5 = vadd.f32 %v750_v12, %v249_v4  ;;  %v752_v13 = vpop.f32.mrb[14].mxu1 }
 0xc84   :  { %v753_v6 = vpop.f32.mrb[15].mxu1  ;;  %v2199_v23 = vmul.f32 -1.442695, %v749_v18 }
 0xc85   :  { %2454 = vtanh.f32 %v751_v5  ;;  %v2200_v38 = vmul.f32 -1.442695, %v751_v5 }
 0xc86   :  { %2456 = vpow2.f32 %v2199_v23 }
 0xc8f   :  { %v2455_v7 = vpop.eup %2454 }
 0xc90   :  { %770 = vrot.lane.b32.xlu1 %v2455_v7, %s2646_s4  ;;  %v2457_v24 = vpop.eup %2456 }
 0xc91   :  { %v761_v25 = vadd.f32 1.0, %v2457_v24 }
 0xc93   :  { %2458 = vrcp.f32 %v761_v25 }
 0xc9d   :  { %v2459_v26 = vpop.eup %2458 }
 0xc9e   :  { %v768_v31 = vmul.f32 %v2459_v26, %v700_v52  ;;  %v942_v52 = vld [vmem:[#allocation3] sm:$0xff] }
 0xc9f   :  { %v3009_v53 = vpack.c.bf16 %v943_v51, %v942_v52 }
 0xd02   :  { %v771_v27 = vpop.permute.xlu1 %770 }
 0xd03   :  { %v773_v28 = vmul.f32 %v2459_v26, %v771_v27 }
 0xd05   :  { %775 = vrot.lane.b32.xlu0 %v773_v28, %s2646_s4 }
 0xd09   :  { %99 = vperm.xlu0 %2344, %v64_v29  }
 0xd77   :  { %v776_v33 = vpop.permute.xlu0 %775 }
 0xd78   :  { %v2975_v34 = vadd.f32 %v776_v33, %v768_v31 }
 0xd7a   :  { %2460 = vtanh.f32 %v2975_v34 }
 0xd7b   :  { %2462 = vpow2.f32 %v2200_v38 }
 0xd84   :  { %v2461_v36 = vpop.eup %2460 }
 0xd85   :  { %781 = vrot.lane.b32.xlu1 %v2461_v36, %s2646_s4  ;;  %v2463_v39 = vpop.eup %2462 }
 0xd86   :  { %v762_v40 = vadd.f32 1.0, %v2463_v39 }
 0xd88   :  { %2464 = vrcp.f32 %v762_v40  ;;  %v100_v61 = vpop.permute.xlu0 %99 }
 0xd89   :  { %175 = vperm.xlu1 %2345, %v140_v37   ;;  %v131_v63 = vmul.f32 %v2822_v21, %v100_v61  ;;  %v130_v29 = vmul.f32 %v2816_v19, %v100_v61  ;;  %v2376_v61 = vld [vmem:[%s3418_s7 + $0x20] ss:$8 sps:$4 sm:$0xff]  }
 0xd92   :  { %v2465_v41 = vpop.eup %2464 }
 0xdf7   :  { %v782_v42 = vpop.permute.xlu1 %781 }
 0xdf8   :  { %v784_v43 = vmul.f32 %v2465_v41, %v782_v42  ;;  %v65_v42 = vld [vmem:[%s3411_s0 + $0x38] sm:$0xff] }
 0xdfa   :  { %785 = vst.msk [vmem:[#allocation3 + $0x28] sm:$0xff] %vm320_vm0, %v784_v43  ;;  %v786_v45 = vpack.c.bf16 %v784_v43, %v784_v43 }
 0xdfc   :  { %2201 = vmatmul.mubr.msk.bf16.vlgmr.msra.gmra.mrb[8].mxu0 %vm320_vm0, %v786_v45 }
 0xdfd   :  { %1027 = vmatpush1.bf16.msra.mxu0 %v2358_v44  ;;  %1058 = vmatprep.mubr.bf16.mxu0 %v2645_v1 }
 0xdfe   :  { %1028 = vmatprep.subr.bf16.mxu0 %v2363_v46  ;;  %v2372_v46 = vld [vmem:[%s3418_s7 + $0x4] ss:$8 sps:$4 sm:$0xff]  }
 0xdff   :  { %1163 = vmatprep.subr.bf16.mxu1 %v2372_v46 }
 0xe01   :  { %1029 = vmatpush1.bf16.msra.mxu0 %v2361_v47  ;;  %v947_v57 = vld [vmem:[#allocation3 + $0x28] sm:$0xff] }
 0xe02   :  { %1030 = vmatprep.subr.bf16.mxu0 %v2366_v48  ;;  %v3019_v59 = vpack.c.bf16 %v947_v57, %v946_v58  ;;  %v141_v48 = vld [vmem:[%s3412_s1 + $0x38] sm:$0xff] }
 0xe03   :  { %v2375_v57 = vld [vmem:[%s3418_s7 + $0x14] ss:$8 sps:$4 sm:$0xff]   ;;  %v2373_v58 = vld [vmem:[%s3418_s7 + $0x10] ss:$8 sps:$4 sm:$0xff]  }
 0xe05   :  { %1031 = vmatpush1.bf16.msra.mxu0 %v2364_v49 }
 0xe06   :  { %1032 = vmatprep.subr.bf16.mxu0 %v2369_v50 }
 0xe08   :  { %v176_v60 = vpop.permute.xlu1 %175 }
 0xe09   :  { %1033 = vmatpush1.bf16.msra.mxu0 %v2367_v2  ;;  %v207_v62 = vmul.f32 %v2825_v22, %v176_v60  ;;  %v206_v28 = vmul.f32 %v2819_v20, %v176_v60  ;;  %v2378_v60 = vld [vmem:[%s3418_s7 + $0x24] ss:$8 sps:$4 sm:$0xff]  }
 0xe0b   :  { %v223_v0 = vadd.f32 %v207_v62, %v131_v63  ;;  %v222_v31 = vadd.f32 %v206_v28, %v130_v29  ;;  %v2381_v62 = vld [vmem:[%s3418_s7 + $0x34] ss:$8 sps:$4 sm:$0xff]   ;;  %v2379_v63 = vld [vmem:[%s3418_s7 + $0x30] ss:$8 sps:$4 sm:$0xff]  }
 0xe0c   :  { %2215 = vmatmul.mubr.msk.bf16.vlgmr.msra.gmra.mrb[12].mxu0 %vm320_vm0, %v3009_v53 }
 0xe0d   :  { %1068 = vmatprep.mubr.bf16.mxu0 %v2645_v1  ;;  %v251_v8 = vadd.f32 %v2838_v32, %v223_v0  ;;  %v250_v33 = vadd.f32 %v2835_v30, %v222_v31 }
 0xe14   :  { %2216 = vmatmul.mubr.msk.bf16.gmra.mrb[16].mxu0 %vm320_vm0, %v3014_v56 }
 0xe15   :  { %1078 = vmatprep.mubr.bf16.mxu0 %v2645_v1 }
 0xe1c   :  { %2217 = vmatmul.mubr.msk.bf16.gmra.mrb[20].mxu0 %vm320_vm0, %v3019_v59 }
 0xe1d   :  { %1088 = vmatprep.mubr.bf16.mxu0 %v2645_v1 }
 0xecf   :  { %v826_v3 = vpop.f32.mrb[8].mxu0 }
 0xed0   :  { %v828_v10 = vpop.f32.mrb[9].mxu0  ;;  %v827_v35 = vadd.f32 %v826_v3, %v250_v33 }
 0xed1   :  { %v829_v4 = vadd.f32 %v828_v10, %v251_v8  ;;  %v830_v12 = vpop.f32.mrb[10].mxu0 }
 0xed2   :  { %v831_v5 = vpop.f32.mrb[11].mxu0  ;;  %v2202_v36 = vmul.f32 -1.442695, %v827_v35 }
 0xed3   :  { %2466 = vtanh.f32 %v829_v4  ;;  %v2203_v49 = vmul.f32 -1.442695, %v829_v4 }
 0xed4   :  { %2468 = vpow2.f32 %v2202_v36 }
 0xedd   :  { %v2467_v13 = vpop.eup %2466 }
 0xede   :  { %848 = vrot.lane.b32.xlu0 %v2467_v13, %s2646_s4  ;;  %v2469_v37 = vpop.eup %2468 }
 0xedf   :  { %v3028_v6 = vpop.f32.mrb[12].mxu0  ;;  %v839_v38 = vadd.f32 1.0, %v2469_v37 }
 0xee0   :  { %v3030_v7 = vpop.f32.mrb[13].mxu0 }
 0xee1   :  { %v3032_v9 = vpop.f32.mrb[14].mxu0  ;;  %2470 = vrcp.f32 %v839_v38 }
 0xee2   :  { %v3034_v11 = vpop.f32.mrb[15].mxu0 }
 0xee7   :  { %v3036_v14 = vpop.f32.mrb[16].mxu0 }
 0xee8   :  { %v3038_v16 = vpop.f32.mrb[17].mxu0 }
 0xee9   :  { %v3040_v18 = vpop.f32.mrb[18].mxu0 }
 0xeea   :  { %v3042_v23 = vpop.f32.mrb[19].mxu0 }
 0xeeb   :  { %v2471_v39 = vpop.eup %2470 }
 0xeec   :  { %v846_v43 = vmul.f32 %v2471_v39, %v2975_v34 }
 0xeef   :  { %v3044_v24 = vpop.f32.mrb[20].mxu0 }
 0xef0   :  { %v3046_v25 = vpop.f32.mrb[21].mxu0 }
 0xef1   :  { %v3048_v26 = vpop.f32.mrb[22].mxu0 }
 0xef2   :  { %v3050_v27 = vpop.f32.mrb[23].mxu0 }
 0xf50   :  { %v849_v40 = vpop.permute.xlu0 %848 }
 0xf51   :  { %v851_v41 = vmul.f32 %v2471_v39, %v849_v40 }
 0xf53   :  { %853 = vrot.lane.b32.xlu1 %v851_v41, %s2646_s4 }
 0xf57   :  { %104 = vperm.xlu1 %2345, %v65_v42  }
 0xfc5   :  { %v854_v44 = vpop.permute.xlu1 %853 }
 0xfc6   :  { %v3060_v45 = vadd.f32 %v854_v44, %v846_v43 }
 0xfc8   :  { %2472 = vtanh.f32 %v3060_v45 }
 0xfc9   :  { %2474 = vpow2.f32 %v2203_v49 }
 0xfd2   :  { %v2473_v47 = vpop.eup %2472 }
 0xfd3   :  { %859 = vrot.lane.b32.xlu0 %v2473_v47, %s2646_s4  ;;  %v2475_v34 = vpop.eup %2474 }
 0xfd4   :  { %v840_v50 = vadd.f32 1.0, %v2475_v34 }
 0xfd6   :  { %2476 = vrcp.f32 %v840_v50  ;;  %v105_v3 = vpop.permute.xlu1 %104 }
 0xfd7   :  { %180 = vperm.xlu0 %2344, %v141_v48   ;;  %v133_v10 = vmul.f32 %v2822_v21, %v105_v3  ;;  %v962_v21 = vld [vmem:[%s3419_s8] sm:$0x3] }
 0xfd8   :  { %v3122_v33 = vrot.slane %v962_v21, %v2805_v15  ;;  %v3125_v35 = vrot.slane %v962_v21, %v2810_v17 }
 0xfda   :  { %v1085_v36 = vadd.f32 %v3048_v26, %v3122_v33  ;;  %v1087_v37 = vadd.f32 %v3050_v27, %v3125_v35  ;;  %v1081_v39 = vadd.f32 %v3044_v24, %v3122_v33  ;;  %v1083_v15 = vadd.f32 %v3046_v25, %v3125_v35 }
 0xfdb   :  { %v1075_v27 = vadd.f32 %v3040_v18, %v3122_v33  ;;  %v1077_v24 = vadd.f32 %v3042_v23, %v3125_v35  ;;  %v1071_v47 = vadd.f32 %v3036_v14, %v3122_v33  ;;  %v1073_v49 = vadd.f32 %v3038_v16, %v3125_v35 }
 0xfe0   :  { %v2477_v2 = vpop.eup %2476 }
0x1045   :  { %v860_v51 = vpop.permute.xlu0 %859 }
0x1046   :  { %v862_v52 = vmul.f32 %v2477_v2, %v860_v51 }
0x1048   :  { %863 = vst.msk [vmem:[#allocation3 + $0x30] sm:$0xff] %vm320_vm0, %v862_v52  ;;  %v864_v55 = vpack.c.bf16 %v862_v52, %v862_v52  ;;  %v132_v52 = vmul.f32 %v2816_v19, %v105_v3  ;;  %v3172_v19 = vld [vmem:[#allocation7 + $0x10] ss:$8 sps:$4 sm:$0xff]  }
0x104a   :  { %2204 = vmatmul.mubr.msk.bf16.vlgmr.msra.gmra.mrb[16].mxu1 %vm320_vm0, %v864_v55 }
0x104b   :  { %1164 = vmatpush1.bf16.msra.mxu1 %v2370_v54  ;;  %1195 = vmatprep.mubr.bf16.mxu1 %v2645_v1 }
0x104c   :  { %1165 = vmatprep.subr.bf16.mxu1 %v2375_v57 }
0x104f   :  { %1166 = vmatpush1.bf16.msra.mxu1 %v2373_v58 }
0x1050   :  { %1167 = vmatprep.subr.bf16.mxu1 %v2378_v60 }
0x1053   :  { %1168 = vmatpush1.bf16.msra.mxu1 %v2376_v61 }
0x1054   :  { %1169 = vmatprep.subr.bf16.mxu1 %v2381_v62 }
0x1056   :  { %v181_v0 = vpop.permute.xlu0 %180 }
0x1057   :  { %1170 = vmatpush1.bf16.msra.mxu1 %v2379_v63  ;;  %v209_v8 = vmul.f32 %v2825_v22, %v181_v0  ;;  %v208_v23 = vmul.f32 %v2819_v20, %v181_v0  ;;  %v3163_v63 = vld [vmem:[#allocation7 + $0x4] ss:$8 sps:$4 sm:$0xff]   ;;  %v3167_v20 = vld [vmem:[#allocation7 + $0x14] ss:$8 sps:$4 sm:$0xff]  }
0x1058   :  { %1334 = vmatprep.subr.bf16.mxu0 %v3163_v63  ;;  %1415 = vmatprep.subr.bf16.mxu1 %v3163_v63 }
0x1059   :  { %v225_v4 = vadd.f32 %v209_v8, %v133_v10  ;;  %v224_v54 = vadd.f32 %v208_v23, %v132_v52  ;;  %v3165_v8 = vld [vmem:[#allocation7] ss:$8 sps:$4 sm:$0xff]   ;;  %v3180_v10 = vld [vmem:[#allocation7 + $0x24] ss:$8 sps:$4 sm:$0xff]  }
0x105a   :  { %2227 = vmatmul.mubr.msk.bf16.vlgmr.msra.gmra.mrb[20].mxu1 %vm320_vm0, %v3009_v53  ;;  %1335 = vmatpush1.bf16.msra.mxu0 %v3165_v8 }
0x105b   :  { %1205 = vmatprep.mubr.bf16.mxu1 %v2645_v1  ;;  %v253_v12 = vadd.f32 %v2838_v32, %v225_v4  ;;  %v252_v14 = vadd.f32 %v2835_v30, %v224_v54  ;;  %1416 = vmatpush1.bf16.msra.mxu1 %v3165_v8  ;;  %v3182_v4 = vld [vmem:[#allocation7 + $0x20] ss:$8 sps:$4 sm:$0xff]  }
0x105c   :  { %1336 = vmatprep.subr.bf16.mxu0 %v3167_v20  ;;  %1417 = vmatprep.subr.bf16.mxu1 %v3167_v20 }
0x105e   :  { %1337 = vmatpush1.bf16.msra.mxu0 %v3172_v19 }
0x105f   :  { %1418 = vmatpush1.bf16.msra.mxu1 %v3172_v19  ;;  %1338 = vmatprep.subr.bf16.mxu0 %v3180_v10 }
0x1060   :  { %1419 = vmatprep.subr.bf16.mxu1 %v3180_v10 }
0x1062   :  { %2228 = vmatmul.mubr.msk.bf16.gmra.mrb[24].mxu1 %vm320_vm0, %v3014_v56  ;;  %1339 = vmatpush1.bf16.msra.mxu0 %v3182_v4 }
0x1063   :  { %1215 = vmatprep.mubr.bf16.mxu1 %v2645_v1  ;;  %1420 = vmatpush1.bf16.msra.mxu1 %v3182_v4 }
0x106a   :  { %2229 = vmatmul.mubr.msk.bf16.gmra.mrb[28].mxu1 %vm320_vm0, %v3019_v59 }
0x106b   :  { %1225 = vmatprep.mubr.bf16.mxu1 %v2645_v1 }
0x111d   :  { %v904_v53 = vpop.f32.mrb[16].mxu1 }
0x111e   :  { %v906_v5 = vpop.f32.mrb[17].mxu1  ;;  %v905_v55 = vadd.f32 %v904_v53, %v252_v14  ;;  %v3184_v53 = vld [vmem:[#allocation7 + $0x34] ss:$8 sps:$4 sm:$0xff]  }
0x111f   :  { %v3106_v13 = vadd.f32 %v906_v5, %v253_v12  ;;  %v908_v56 = vpop.f32.mrb[18].mxu1  ;;  %1340 = vmatprep.subr.bf16.mxu0 %v3184_v53  ;;  %1421 = vmatprep.subr.bf16.mxu1 %v3184_v53  ;;  %v3192_v12 = vld [vmem:[#allocation7 + $0x30] ss:$8 sps:$4 sm:$0xff]  }
0x1120   :  { %v909_v28 = vpop.f32.mrb[19].mxu1  ;;  %v2205_v57 = vmul.f32 -1.442695, %v905_v55  ;;  %1341 = vmatpush1.bf16.msra.mxu0 %v3192_v12  ;;  %1422 = vmatpush1.bf16.msra.mxu1 %v3192_v12 }
0x1121   :  { %2478 = vtanh.f32 %v3106_v13  ;;  %1494 = vmatprep.subr.bf16.mxu0 %v3163_v63  ;;  %1573 = vmatprep.subr.bf16.mxu1 %v3163_v63  ;;  %v2206_v5 = vmul.f32 -1.442695, %v3106_v13  ;;  %v1065_v13 = vadd.f32 %v3032_v9, %v3122_v33 }
0x1122   :  { %2480 = vpow2.f32 %v2205_v57 }
0x112b   :  { %v2479_v59 = vpop.eup %2478 }
0x112c   :  { %926 = vrot.lane.b32.xlu1 %v2479_v59, %s2646_s4  ;;  %v2481_v58 = vpop.eup %2480 }
0x112d   :  { %v3110_v29 = vpop.f32.mrb[20].mxu1  ;;  %v917_v16 = vadd.f32 1.0, %v2481_v58 }
0x112e   :  { %v3112_v31 = vpop.f32.mrb[21].mxu1 }
0x112f   :  { %v3117_v22 = vpop.f32.mrb[22].mxu1  ;;  %2482 = vrcp.f32 %v917_v16 }
0x1130   :  { %v3119_v32 = vpop.f32.mrb[23].mxu1 }
0x1135   :  { %v1207_v38 = vpop.f32.mrb[24].mxu1 }
0x1136   :  { %v3133_v40 = vadd.f32 %v1207_v38, %v1085_v36  ;;  %v1209_v41 = vpop.f32.mrb[25].mxu1 }
0x1137   :  { %v3137_v42 = vadd.f32 %v1209_v41, %v1087_v37  ;;  %v1211_v17 = vpop.f32.mrb[26].mxu1  ;;  %v948_v37 = vld [vmem:[#allocation3 + $0x30] sm:$0xff]  ;;  %v1067_v41 = vadd.f32 %v3034_v11, %v3125_v35 }
0x1138   :  { %v3139_v43 = vadd.f32 %v1211_v17, %v1081_v39  ;;  %v1213_v44 = vpop.f32.mrb[27].mxu1 }
0x1139   :  { %v3141_v26 = vadd.f32 %v1213_v44, %v1083_v15  ;;  %v2483_v60 = vpop.eup %2482  ;;  %v1061_v44 = vadd.f32 %v3028_v6, %v3122_v33 }
0x113a   :  { %v924_v30 = vmul.f32 %v2483_v60, %v3060_v45 }
0x113d   :  { %v1217_v46 = vpop.f32.mrb[28].mxu1 }
0x113e   :  { %v3149_v48 = vadd.f32 %v1217_v46, %v1075_v27  ;;  %v1219_v25 = vpop.f32.mrb[29].mxu1 }
0x113f   :  { %v3153_v34 = vadd.f32 %v1219_v25, %v1077_v24  ;;  %v1221_v50 = vpop.f32.mrb[30].mxu1  ;;  %v1063_v25 = vadd.f32 %v3030_v7, %v3125_v35 }
0x1140   :  { %v3155_v2 = vadd.f32 %v1221_v50, %v1071_v47  ;;  %v1223_v51 = vpop.f32.mrb[31].mxu1 }
0x1141   :  { %v3157_v18 = vadd.f32 %v1223_v51, %v1073_v49 }
0x119e   :  { %v927_v61 = vpop.permute.xlu1 %926 }
0x119f   :  { %v929_v62 = vmul.f32 %v2483_v60, %v927_v61 }
0x11a1   :  { %931 = vrot.lane.b32.xlu0 %v929_v62, %s2646_s4 }
0x1213   :  { %v932_v0 = vpop.permute.xlu0 %931 }
0x1214   :  { %v934_v3 = vadd.f32 %v932_v0, %v924_v30 }
0x1216   :  { %2484 = vtanh.f32 %v934_v3 }
0x1217   :  { %2486 = vpow2.f32 %v2206_v5 }
0x1220   :  { %v2485_v45 = vpop.eup %2484 }
0x1221   :  { %937 = vrot.lane.b32.xlu1 %v2485_v45, %s2646_s4  ;;  %v2487_v56 = vpop.eup %2486 }
0x1222   :  { %v918_v28 = vadd.f32 1.0, %v2487_v56 }
0x1224   :  { %2488 = vrcp.f32 %v918_v28 }
0x122e   :  { %v2489_v59 = vpop.eup %2488 }
0x1293   :  { %v938_v21 = vpop.permute.xlu1 %937 }
0x1294   :  { %v940_v36 = vmul.f32 %v2489_v59, %v938_v21 }
0x1296   :  { %941 = vst.msk [vmem:[#allocation3 + $0x38] sm:$0xff] %vm320_vm0, %v940_v36 }
0x129d   :  { %v949_v38 = vld [vmem:[#allocation3 + $0x38] sm:$0xff] }
0x129e   :  { %v953_v39 = vpack.c.bf16 %v949_v38, %v948_v37 }
0x12a0   :  { %2218 = vmatmul.mubr.msk.bf16.gmra.mrb[24].mxu0 %vm320_vm0, %v953_v39  ;;  %2230 = vmatmul.mubr.msk.bf16.gmra.mrb[32].mxu1 %vm320_vm0, %v953_v39 }
0x12a1   :  { %1366 = vmatprep.mubr.bf16.mxu0 %v2645_v1  ;;  %1447 = vmatprep.mubr.bf16.mxu1 %v2645_v1 }
0x12a8   :  { %1367 = vmatmul.mubr.bf16.vlgmr.msra.gmra.mrb[28].mxu0 %v2645_v1 }
0x12a9   :  { %1495 = vmatpush1.bf16.msra.mxu0 %v3165_v8  ;;  %1526 = vmatprep.mubr.bf16.mxu0 %v2645_v1 }
0x12aa   :  { %1496 = vmatprep.subr.bf16.mxu0 %v3167_v20 }
0x12ad   :  { %1497 = vmatpush1.bf16.msra.mxu0 %v3172_v19 }
0x12ae   :  { %1498 = vmatprep.subr.bf16.mxu0 %v3180_v10 }
0x12b1   :  { %1499 = vmatpush1.bf16.msra.mxu0 %v3182_v4 }
0x12b2   :  { %1500 = vmatprep.subr.bf16.mxu0 %v3184_v53 }
0x12b5   :  { %1501 = vmatpush1.bf16.msra.mxu0 %v3192_v12 }
0x12b6   :  { %1652 = vmatprep.subr.bf16.mxu0 %v3163_v63 }
0x1373   :  { %v1090_v15 = vpop.f32.mrb[24].mxu0  ;;  %v1227_v17 = vpop.f32.mrb[32].mxu1 }
0x1374   :  { %v1091_v27 = vadd.f32 %v1090_v15, %v3122_v33  ;;  %v3222_v24 = vadd.f32 %v1227_v17, %v1065_v13  ;;  %v1092_v46 = vpop.f32.mrb[25].mxu0  ;;  %v1229_v47 = vpop.f32.mrb[33].mxu1 }
0x1375   :  { %v1093_v49 = vadd.f32 %v1092_v46, %v3125_v35  ;;  %v3227_v9 = vadd.f32 %v1229_v47, %v1067_v41  ;;  %v1094_v50 = vpop.f32.mrb[26].mxu0  ;;  %v1231_v11 = vpop.f32.mrb[34].mxu1 }
0x1376   :  { %v1095_v51 = vadd.f32 %v1094_v50, %v3122_v33  ;;  %v1238_v23 = vadd.f32 %v1231_v11, %v1061_v44  ;;  %v1096_v52 = vpop.f32.mrb[27].mxu0  ;;  %v1233_v6 = vpop.f32.mrb[35].mxu1  ;;  %v3231_v54 = vadd.f32 %v3117_v22, %v1091_v27 }
0x1377   :  { %v1097_v14 = vadd.f32 %v1096_v52, %v3125_v35  ;;  %v1239_v55 = vadd.f32 %v1233_v6, %v1063_v25  ;;  %v3235_v57 = vadd.f32 %v3119_v32, %v1093_v49 }
0x1378   :  { %v3238_v7 = vadd.f32 %v3110_v29, %v1095_v51 }
0x1379   :  { %v3241_v58 = vadd.f32 %v3112_v31, %v1097_v14 }
0x137b   :  { %v1368_v16 = vpop.f32.mrb[28].mxu0 }
0x137c   :  { %v1369_v33 = vadd.f32 %v1368_v16, %v1238_v23  ;;  %v1370_v60 = vpop.f32.mrb[29].mxu0 }
0x137d   :  { %v1371_v61 = vadd.f32 %v1370_v60, %v1239_v55  ;;  %v1372_v62 = vpop.f32.mrb[30].mxu0 }
0x137e   :  { %v1373_v30 = vpop.f32.mrb[31].mxu0  ;;  %v2239_v35 = vmul.f32 -1.442695, %v1369_v33 }
0x137f   :  { %2490 = vtanh.f32 %v1371_v61  ;;  %v2240_v59 = vmul.f32 -1.442695, %v1371_v61 }
0x1380   :  { %2492 = vpow2.f32 %v2239_v35 }
0x1389   :  { %v2491_v22 = vpop.eup %2490 }
0x138a   :  { %1390 = vrot.lane.b32.xlu0 %v2491_v22, %s2646_s4  ;;  %v2493_v32 = vpop.eup %2492 }
0x138b   :  { %v1381_v0 = vadd.f32 1.0, %v2493_v32 }
0x138d   :  { %2494 = vrcp.f32 %v1381_v0 }
0x1397   :  { %v2495_v29 = vpop.eup %2494 }
0x1398   :  { %v1388_v31 = vmul.f32 0.0, %v2495_v29 }
0x13fc   :  { %v1391_v3 = vpop.permute.xlu0 %1390 }
0x13fd   :  { %v1393_v45 = vmul.f32 %v2495_v29, %v1391_v3 }
0x13ff   :  { %1395 = vrot.lane.b32.xlu1 %v1393_v45, %s2646_s4 }
0x1471   :  { %v1396_v5 = vpop.permute.xlu1 %1395 }
0x1472   :  { %v1398_v56 = vadd.f32 %v1396_v5, %v1388_v31 }
0x1474   :  { %2496 = vtanh.f32 %v1398_v56 }
0x1475   :  { %2498 = vpow2.f32 %v2240_v59 }
0x147e   :  { %v2497_v28 = vpop.eup %2496 }
0x147f   :  { %1401 = vrot.lane.b32.xlu0 %v2497_v28, %s2646_s4  ;;  %v2499_v21 = vpop.eup %2498 }
0x1480   :  { %v1382_v36 = vadd.f32 1.0, %v2499_v21 }
0x1482   :  { %2500 = vrcp.f32 %v1382_v36 }
0x148c   :  { %v2501_v37 = vpop.eup %2500 }
0x14f1   :  { %v1402_v38 = vpop.permute.xlu0 %1401 }
0x14f2   :  { %v1404_v39 = vmul.f32 %v2501_v37, %v1402_v38 }
0x14f4   :  { %1406 = vst.msk [vmem:[#allocation5] sm:$0xff] %vm1405_vm1, %v1404_v39  ;;  %v1409_v13 = vpack.c.bf16 %v1404_v39, %v1404_v39 }
0x14f5   :  { %1408 = vst.msk [vmem:[#allocation5 + $0x38] sm:$0xff] %vm1407_vm2, %v1404_v39 }
0x14f6   :  { %2241 = vmatmul.mubr.msk.bf16.vlgmr.msra.gmra.mrb[36].mxu1 %vm320_vm0, %v1409_v13 }
0x14f7   :  { %1574 = vmatpush1.bf16.msra.mxu1 %v3165_v8  ;;  %1605 = vmatprep.mubr.bf16.mxu1 %v2645_v1 }
0x14f8   :  { %1575 = vmatprep.subr.bf16.mxu1 %v3167_v20 }
0x14fb   :  { %1576 = vmatpush1.bf16.msra.mxu1 %v3172_v19 }
0x14fc   :  { %1577 = vmatprep.subr.bf16.mxu1 %v3180_v10 }
0x14ff   :  { %1578 = vmatpush1.bf16.msra.mxu1 %v3182_v4 }
0x1500   :  { %1579 = vmatprep.subr.bf16.mxu1 %v3184_v53 }
0x1503   :  { %1580 = vmatpush1.bf16.msra.mxu1 %v3192_v12 }
0x1504   :  { %1731 = vmatprep.subr.bf16.mxu1 %v3163_v63 }
0x15c9   :  { %v1449_v41 = vpop.f32.mrb[36].mxu1 }
0x15ca   :  { %v1450_v15 = vadd.f32 %v1449_v41, %v3222_v24  ;;  %v1451_v17 = vpop.f32.mrb[37].mxu1 }
0x15cb   :  { %v1452_v44 = vadd.f32 %v1451_v17, %v3227_v9  ;;  %v1453_v27 = vpop.f32.mrb[38].mxu1 }
0x15cc   :  { %v1454_v46 = vpop.f32.mrb[39].mxu1  ;;  %v2242_v25 = vmul.f32 -1.442695, %v1450_v15 }
0x15cd   :  { %2502 = vtanh.f32 %v1452_v44  ;;  %v2243_v14 = vmul.f32 -1.442695, %v1452_v44 }
0x15ce   :  { %2504 = vpow2.f32 %v2242_v25 }
0x15d7   :  { %v2503_v47 = vpop.eup %2502 }
0x15d8   :  { %1471 = vrot.lane.b32.xlu1 %v2503_v47, %s2646_s4  ;;  %v2505_v49 = vpop.eup %2504 }
0x15d9   :  { %v1462_v50 = vadd.f32 1.0, %v2505_v49 }
0x15db   :  { %2506 = vrcp.f32 %v1462_v50 }
0x15e5   :  { %v2507_v11 = vpop.eup %2506 }
0x15e6   :  { %v1469_v24 = vmul.f32 %v2507_v11, %v1398_v56 }
0x164a   :  { %v1472_v51 = vpop.permute.xlu1 %1471 }
0x164b   :  { %v1474_v23 = vmul.f32 %v2507_v11, %v1472_v51 }
0x164d   :  { %1476 = vrot.lane.b32.xlu0 %v1474_v23, %s2646_s4 }
0x16bf   :  { %v1477_v52 = vpop.permute.xlu0 %1476 }
0x16c0   :  { %v1479_v6 = vadd.f32 %v1477_v52, %v1469_v24 }
0x16c2   :  { %2508 = vtanh.f32 %v1479_v6 }
0x16c3   :  { %2510 = vpow2.f32 %v2243_v14 }
0x16cc   :  { %v2509_v9 = vpop.eup %2508 }
0x16cd   :  { %1482 = vrot.lane.b32.xlu1 %v2509_v9, %s2646_s4  ;;  %v2511_v55 = vpop.eup %2510 }
0x16ce   :  { %v1463_v16 = vadd.f32 1.0, %v2511_v55 }
0x16d0   :  { %2512 = vrcp.f32 %v1463_v16 }
0x16da   :  { %v2513_v33 = vpop.eup %2512 }
0x173f   :  { %v1483_v60 = vpop.permute.xlu1 %1482 }
0x1740   :  { %v1485_v61 = vmul.f32 %v2513_v33, %v1483_v60 }
0x1742   :  { %1486 = vst.msk [vmem:[#allocation5 + $0x8] sm:$0xff] %vm1405_vm1, %v1485_v61  ;;  %v1488_v62 = vpack.c.bf16 %v1485_v61, %v1485_v61 }
0x1743   :  { %1487 = vst.msk [vmem:[#allocation5 + $0x30] sm:$0xff] %vm1407_vm2, %v1485_v61 }
0x1744   :  { %2244 = vmatmul.mubr.msk.bf16.vlgmr.msra.gmra.mrb[32].mxu0 %vm320_vm0, %v1488_v62 }
0x1745   :  { %1653 = vmatpush1.bf16.msra.mxu0 %v3165_v8  ;;  %1684 = vmatprep.mubr.bf16.mxu0 %v2645_v1 }
0x1746   :  { %1654 = vmatprep.subr.bf16.mxu0 %v3167_v20 }
0x1749   :  { %1655 = vmatpush1.bf16.msra.mxu0 %v3172_v19 }
0x174a   :  { %1656 = vmatprep.subr.bf16.mxu0 %v3180_v10 }
0x174d   :  { %1657 = vmatpush1.bf16.msra.mxu0 %v3182_v4 }
0x174e   :  { %1658 = vmatprep.subr.bf16.mxu0 %v3184_v53 }
0x1751   :  { %1659 = vmatpush1.bf16.msra.mxu0 %v3192_v12 }
0x1752   :  { %1810 = vmatprep.subr.bf16.mxu0 %v3163_v63 }
0x1817   :  { %v1528_v30 = vpop.f32.mrb[32].mxu0 }
0x1818   :  { %v1529_v22 = vadd.f32 %v1528_v30, %v3155_v2  ;;  %v1530_v35 = vpop.f32.mrb[33].mxu0 }
0x1819   :  { %v1531_v32 = vadd.f32 %v1530_v35, %v3157_v18  ;;  %v1532_v0 = vpop.f32.mrb[34].mxu0 }
0x181a   :  { %v1533_v29 = vpop.f32.mrb[35].mxu0  ;;  %v2245_v45 = vmul.f32 -1.442695, %v1529_v22 }
0x181b   :  { %2514 = vtanh.f32 %v1531_v32  ;;  %v2246_v37 = vmul.f32 -1.442695, %v1531_v32 }
0x181c   :  { %2516 = vpow2.f32 %v2245_v45 }
0x1825   :  { %v2515_v3 = vpop.eup %2514 }
0x1826   :  { %1550 = vrot.lane.b32.xlu0 %v2515_v3, %s2646_s4  ;;  %v2517_v31 = vpop.eup %2516 }
0x1827   :  { %v1541_v5 = vadd.f32 1.0, %v2517_v31 }
0x1829   :  { %2518 = vrcp.f32 %v1541_v5 }
0x1833   :  { %v2519_v56 = vpop.eup %2518 }
0x1834   :  { %v1548_v2 = vmul.f32 %v2519_v56, %v1479_v6 }
0x1898   :  { %v1551_v28 = vpop.permute.xlu0 %1550 }
0x1899   :  { %v1553_v59 = vmul.f32 %v2519_v56, %v1551_v28 }
0x189b   :  { %1555 = vrot.lane.b32.xlu1 %v1553_v59, %s2646_s4 }
0x190d   :  { %v1556_v21 = vpop.permute.xlu1 %1555 }
0x190e   :  { %v1558_v36 = vadd.f32 %v1556_v21, %v1548_v2 }
0x1910   :  { %2520 = vtanh.f32 %v1558_v36 }
0x1911   :  { %2522 = vpow2.f32 %v2246_v37 }
0x191a   :  { %v2521_v18 = vpop.eup %2520 }
0x191b   :  { %1561 = vrot.lane.b32.xlu0 %v2521_v18, %s2646_s4  ;;  %v2523_v38 = vpop.eup %2522 }
0x191c   :  { %v1542_v39 = vadd.f32 1.0, %v2523_v38 }
0x191e   :  { %2524 = vrcp.f32 %v1542_v39 }
0x1928   :  { %v2525_v13 = vpop.eup %2524 }
0x198d   :  { %v1562_v41 = vpop.permute.xlu0 %1561 }
0x198e   :  { %v1564_v15 = vmul.f32 %v2525_v13, %v1562_v41 }
0x1990   :  { %1565 = vst.msk [vmem:[#allocation5 + $0x10] sm:$0xff] %vm1405_vm1, %v1564_v15  ;;  %v1567_v17 = vpack.c.bf16 %v1564_v15, %v1564_v15 }
0x1991   :  { %1566 = vst.msk [vmem:[#allocation5 + $0x28] sm:$0xff] %vm1407_vm2, %v1564_v15 }
0x1992   :  { %2247 = vmatmul.mubr.msk.bf16.vlgmr.msra.gmra.mrb[40].mxu1 %vm320_vm0, %v1567_v17 }
0x1993   :  { %1732 = vmatpush1.bf16.msra.mxu1 %v3165_v8  ;;  %1763 = vmatprep.mubr.bf16.mxu1 %v2645_v1 }
0x1994   :  { %1733 = vmatprep.subr.bf16.mxu1 %v3167_v20 }
0x1997   :  { %1734 = vmatpush1.bf16.msra.mxu1 %v3172_v19 }
0x1998   :  { %1735 = vmatprep.subr.bf16.mxu1 %v3180_v10 }
0x199b   :  { %1736 = vmatpush1.bf16.msra.mxu1 %v3182_v4 }
0x199c   :  { %1737 = vmatprep.subr.bf16.mxu1 %v3184_v53 }
0x199f   :  { %1738 = vmatpush1.bf16.msra.mxu1 %v3192_v12 }
0x19a0   :  { %1889 = vmatprep.subr.bf16.mxu1 %v3163_v63 }
0x1a65   :  { %v1607_v44 = vpop.f32.mrb[40].mxu1 }
0x1a66   :  { %v1608_v27 = vadd.f32 %v1607_v44, %v3149_v48  ;;  %v1609_v46 = vpop.f32.mrb[41].mxu1 }
0x1a67   :  { %v1610_v47 = vadd.f32 %v1609_v46, %v3153_v34  ;;  %v1611_v25 = vpop.f32.mrb[42].mxu1 }
0x1a68   :  { %v1612_v49 = vpop.f32.mrb[43].mxu1  ;;  %v2248_v11 = vmul.f32 -1.442695, %v1608_v27 }
0x1a69   :  { %2526 = vtanh.f32 %v1610_v47  ;;  %v2249_v14 = vmul.f32 -1.442695, %v1610_v47 }
0x1a6a   :  { %2528 = vpow2.f32 %v2248_v11 }
0x1a73   :  { %v2527_v50 = vpop.eup %2526 }
0x1a74   :  { %1629 = vrot.lane.b32.xlu1 %v2527_v50, %s2646_s4  ;;  %v2529_v51 = vpop.eup %2528 }
0x1a75   :  { %v1620_v23 = vadd.f32 1.0, %v2529_v51 }
0x1a77   :  { %2530 = vrcp.f32 %v1620_v23 }
0x1a81   :  { %v2531_v24 = vpop.eup %2530 }
0x1a82   :  { %v1627_v48 = vmul.f32 %v2531_v24, %v1558_v36 }
0x1ae6   :  { %v1630_v52 = vpop.permute.xlu1 %1629 }
0x1ae7   :  { %v1632_v63 = vmul.f32 %v2531_v24, %v1630_v52 }
0x1ae9   :  { %1634 = vrot.lane.b32.xlu0 %v1632_v63, %s2646_s4 }
0x1b5b   :  { %v1635_v6 = vpop.permute.xlu0 %1634 }
0x1b5c   :  { %v1637_v9 = vadd.f32 %v1635_v6, %v1627_v48 }
0x1b5e   :  { %2532 = vtanh.f32 %v1637_v9 }
0x1b5f   :  { %2534 = vpow2.f32 %v2249_v14 }
0x1b68   :  { %v2533_v34 = vpop.eup %2532 }
0x1b69   :  { %1640 = vrot.lane.b32.xlu1 %v2533_v34, %s2646_s4  ;;  %v2535_v55 = vpop.eup %2534 }
0x1b6a   :  { %v1621_v16 = vadd.f32 1.0, %v2535_v55 }
0x1b6c   :  { %2536 = vrcp.f32 %v1621_v16 }
0x1b76   :  { %v2537_v33 = vpop.eup %2536 }
0x1bdb   :  { %v1641_v60 = vpop.permute.xlu1 %1640 }
0x1bdc   :  { %v1643_v61 = vmul.f32 %v2537_v33, %v1641_v60 }
0x1bde   :  { %1644 = vst.msk [vmem:[#allocation5 + $0x18] sm:$0xff] %vm1405_vm1, %v1643_v61  ;;  %v1646_v62 = vpack.c.bf16 %v1643_v61, %v1643_v61 }
0x1bdf   :  { %1645 = vst.msk [vmem:[#allocation5 + $0x20] sm:$0xff] %vm1407_vm2, %v1643_v61 }
0x1be0   :  { %2250 = vmatmul.mubr.msk.bf16.vlgmr.msra.gmra.mrb[36].mxu0 %vm320_vm0, %v1646_v62 }
0x1be1   :  { %1811 = vmatpush1.bf16.msra.mxu0 %v3165_v8  ;;  %1842 = vmatprep.mubr.bf16.mxu0 %v2645_v1 }
0x1be2   :  { %1812 = vmatprep.subr.bf16.mxu0 %v3167_v20 }
0x1be5   :  { %1813 = vmatpush1.bf16.msra.mxu0 %v3172_v19 }
0x1be6   :  { %1814 = vmatprep.subr.bf16.mxu0 %v3180_v10 }
0x1be9   :  { %1815 = vmatpush1.bf16.msra.mxu0 %v3182_v4 }
0x1bea   :  { %1816 = vmatprep.subr.bf16.mxu0 %v3184_v53 }
0x1bed   :  { %1817 = vmatpush1.bf16.msra.mxu0 %v3192_v12 }
0x1cb3   :  { %v1686_v30 = vpop.f32.mrb[36].mxu0 }
0x1cb4   :  { %v1687_v22 = vadd.f32 %v1686_v30, %v3139_v43  ;;  %v1688_v35 = vpop.f32.mrb[37].mxu0 }
0x1cb5   :  { %v1689_v32 = vadd.f32 %v1688_v35, %v3141_v26  ;;  %v1690_v0 = vpop.f32.mrb[38].mxu0 }
0x1cb6   :  { %v1691_v29 = vpop.f32.mrb[39].mxu0  ;;  %v2251_v45 = vmul.f32 -1.442695, %v1687_v22 }
0x1cb7   :  { %2538 = vtanh.f32 %v1689_v32  ;;  %v2252_v36 = vmul.f32 -1.442695, %v1689_v32 }
0x1cb8   :  { %2540 = vpow2.f32 %v2251_v45 }
0x1cc1   :  { %v2539_v3 = vpop.eup %2538 }
0x1cc2   :  { %1708 = vrot.lane.b32.xlu0 %v2539_v3, %s2646_s4  ;;  %v2541_v31 = vpop.eup %2540 }
0x1cc3   :  { %v1699_v5 = vadd.f32 1.0, %v2541_v31 }
0x1cc5   :  { %2542 = vrcp.f32 %v1699_v5 }
0x1ccf   :  { %v2543_v56 = vpop.eup %2542 }
0x1cd0   :  { %v1706_v43 = vmul.f32 %v2543_v56, %v1637_v9 }
0x1d34   :  { %v1709_v28 = vpop.permute.xlu0 %1708 }
0x1d35   :  { %v1711_v59 = vmul.f32 %v2543_v56, %v1709_v28 }
0x1d37   :  { %1713 = vrot.lane.b32.xlu1 %v1711_v59, %s2646_s4 }
0x1da9   :  { %v1714_v2 = vpop.permute.xlu1 %1713 }
0x1daa   :  { %v1716_v21 = vadd.f32 %v1714_v2, %v1706_v43 }
0x1dac   :  { %2544 = vtanh.f32 %v1716_v21 }
0x1dad   :  { %2546 = vpow2.f32 %v2252_v36 }
0x1db6   :  { %v2545_v26 = vpop.eup %2544 }
0x1db7   :  { %1719 = vrot.lane.b32.xlu0 %v2545_v26, %s2646_s4  ;;  %v2547_v18 = vpop.eup %2546 }
0x1db8   :  { %v1700_v37 = vadd.f32 1.0, %v2547_v18 }
0x1dba   :  { %2548 = vrcp.f32 %v1700_v37 }
0x1dc4   :  { %v2549_v38 = vpop.eup %2548 }
0x1e29   :  { %v1720_v39 = vpop.permute.xlu0 %1719 }
0x1e2a   :  { %v1722_v13 = vmul.f32 %v2549_v38, %v1720_v39 }
0x1e2c   :  { %1723 = vst.msk [vmem:[#allocation5 + $0x20] sm:$0xff] %vm1405_vm1, %v1722_v13  ;;  %v1725_v41 = vpack.c.bf16 %v1722_v13, %v1722_v13 }
0x1e2d   :  { %1724 = vst.msk [vmem:[#allocation5 + $0x18] sm:$0xff] %vm1407_vm2, %v1722_v13 }
0x1e2e   :  { %2253 = vmatmul.mubr.msk.bf16.vlgmr.msra.gmra.mrb[44].mxu1 %vm320_vm0, %v1725_v41  ;;  %v1972_v41 = vld [vmem:[%s3421_s10 + $0x10] sm:$0xff] }
0x1e2f   :  { %1890 = vmatpush1.bf16.msra.mxu1 %v3165_v8  ;;  %1921 = vmatprep.mubr.bf16.mxu1 %v2645_v1 }
0x1e30   :  { %1891 = vmatprep.subr.bf16.mxu1 %v3167_v20 }
0x1e33   :  { %1892 = vmatpush1.bf16.msra.mxu1 %v3172_v19 }
0x1e34   :  { %1893 = vmatprep.subr.bf16.mxu1 %v3180_v10 }
0x1e37   :  { %1894 = vmatpush1.bf16.msra.mxu1 %v3182_v4 }
0x1e38   :  { %1895 = vmatprep.subr.bf16.mxu1 %v3184_v53 }
0x1e3b   :  { %1896 = vmatpush1.bf16.msra.mxu1 %v3192_v12 }
0x1f01   :  { %v1765_v15 = vpop.f32.mrb[44].mxu1 }
0x1f02   :  { %v1766_v17 = vadd.f32 %v1765_v15, %v3133_v40  ;;  %v1767_v44 = vpop.f32.mrb[45].mxu1 }
0x1f03   :  { %v1768_v8 = vadd.f32 %v1767_v44, %v3137_v42  ;;  %v1769_v27 = vpop.f32.mrb[46].mxu1 }
0x1f04   :  { %v1770_v1 = vpop.f32.mrb[47].mxu1  ;;  %v2254_v19 = vmul.f32 -1.442695, %v1766_v17  ;;  %v1973_v17 = vld [vmem:[%s3421_s10 + $0x18] sm:$0xff] }
0x1f05   :  { %2550 = vtanh.f32 %v1768_v8  ;;  %v2255_v49 = vmul.f32 -1.442695, %v1768_v8  ;;  %v2327_v44 = vpack.c.bf16 %v1973_v17, %v1972_v41 }
0x1f06   :  { %2552 = vpow2.f32 %v2254_v19  ;;  %v1975_v19 = vld [vmem:[%s3421_s10 + $0x28] sm:$0xff] }
0x1f0f   :  { %v2551_v20 = vpop.eup %2550 }
0x1f10   :  { %1787 = vrot.lane.b32.xlu1 %v2551_v20, %s2646_s4  ;;  %v2553_v10 = vpop.eup %2552  ;;  %v1974_v20 = vld [vmem:[%s3421_s10 + $0x20] sm:$0xff] }
0x1f11   :  { %v1778_v4 = vadd.f32 1.0, %v2553_v10  ;;  %v2331_v10 = vpack.c.bf16 %v1975_v19, %v1974_v20 }
0x1f13   :  { %2554 = vrcp.f32 %v1778_v4  ;;  %v1976_v4 = vld [vmem:[%s3421_s10 + $0x30] sm:$0xff] }
0x1f1d   :  { %v2555_v53 = vpop.eup %2554 }
0x1f1e   :  { %v1785_v40 = vmul.f32 %v2555_v53, %v1716_v21 }
0x1f82   :  { %v1788_v46 = vpop.permute.xlu1 %1787 }
0x1f83   :  { %v1790_v12 = vmul.f32 %v2555_v53, %v1788_v46  ;;  %v1977_v53 = vld [vmem:[%s3421_s10 + $0x38] sm:$0xff] }
0x1f84   :  { %v2335_v46 = vpack.c.bf16 %v1977_v53, %v1976_v4 }
0x1f85   :  { %1792 = vrot.lane.b32.xlu0 %v1790_v12, %s2646_s4 }
0x1ff7   :  { %v1793_v47 = vpop.permute.xlu0 %1792 }
0x1ff8   :  { %v1795_v25 = vadd.f32 %v1793_v47, %v1785_v40 }
0x1ffa   :  { %2556 = vtanh.f32 %v1795_v25 }
0x1ffb   :  { %2558 = vpow2.f32 %v2255_v49 }
0x2004   :  { %v2557_v42 = vpop.eup %2556 }
0x2005   :  { %1798 = vrot.lane.b32.xlu1 %v2557_v42, %s2646_s4  ;;  %v2559_v50 = vpop.eup %2558 }
0x2006   :  { %v1779_v11 = vadd.f32 1.0, %v2559_v50 }
0x2008   :  { %2560 = vrcp.f32 %v1779_v11 }
0x2012   :  { %v2561_v51 = vpop.eup %2560 }
0x2077   :  { %v1799_v23 = vpop.permute.xlu1 %1798 }
0x2078   :  { %v1801_v24 = vmul.f32 %v2561_v51, %v1799_v23 }
0x207a   :  { %1802 = vst.msk [vmem:[#allocation5 + $0x28] sm:$0xff] %vm1405_vm1, %v1801_v24  ;;  %v1804_v52 = vpack.c.bf16 %v1801_v24, %v1801_v24 }
0x207b   :  { %1803 = vst.msk [vmem:[#allocation5 + $0x10] sm:$0xff] %vm1407_vm2, %v1801_v24  ;;  %v1965_v24 = vld [vmem:[#allocation5 + $0x18] sm:$0xff] }
0x207c   :  { %2256 = vmatmul.mubr.msk.bf16.vlgmr.msra.gmra.mrb[40].mxu0 %vm320_vm0, %v1804_v52  ;;  %v1966_v52 = vld [vmem:[#allocation5 + $0x20] sm:$0xff] }
0x2082   :  { %v1964_v23 = vld [vmem:[#allocation5 + $0x10] sm:$0xff] }
0x214f   :  { %v1844_v63 = vpop.f32.mrb[40].mxu0 }
0x2150   :  { %v1845_v48 = vadd.f32 %v1844_v63, %v3231_v54  ;;  %v1846_v6 = vpop.f32.mrb[41].mxu0  ;;  %v1967_v63 = vld [vmem:[#allocation5 + $0x28] sm:$0xff] }
0x2151   :  { %v1847_v9 = vadd.f32 %v1846_v6, %v3235_v57  ;;  %v1848_v34 = vpop.f32.mrb[42].mxu0 }
0x2152   :  { %v1849_v14 = vpop.f32.mrb[43].mxu0  ;;  %v2257_v16 = vmul.f32 -1.442695, %v1845_v48 }
0x2153   :  { %2562 = vtanh.f32 %v1847_v9  ;;  %v2258_v32 = vmul.f32 -1.442695, %v1847_v9  ;;  %v2262_v9 = vld [vmem:[#allocation6] ss:$0 sm:$0xff] }
0x2154   :  { %2564 = vpow2.f32 %v2257_v16 }
0x215d   :  { %v2563_v55 = vpop.eup %2562 }
0x215e   :  { %1866 = vrot.lane.b32.xlu0 %v2563_v55, %s2646_s4  ;;  %v2565_v33 = vpop.eup %2564 }
0x215f   :  { %v1857_v60 = vadd.f32 1.0, %v2565_v33 }
0x2161   :  { %2566 = vrcp.f32 %v1857_v60 }
0x216b   :  { %v2567_v61 = vpop.eup %2566 }
0x216c   :  { %v1864_v54 = vmul.f32 %v2567_v61, %v1795_v25 }
0x21d0   :  { %v1867_v62 = vpop.permute.xlu0 %1866 }
0x21d1   :  { %v1869_v30 = vmul.f32 %v2567_v61, %v1867_v62 }
0x21d3   :  { %1871 = vrot.lane.b32.xlu1 %v1869_v30, %s2646_s4 }
0x2245   :  { %v1872_v22 = vpop.permute.xlu1 %1871 }
0x2246   :  { %v1874_v35 = vadd.f32 %v1872_v22, %v1864_v54 }
0x2248   :  { %2568 = vtanh.f32 %v1874_v35 }
0x2249   :  { %2570 = vpow2.f32 %v2258_v32 }
0x2252   :  { %v2569_v57 = vpop.eup %2568 }
0x2253   :  { %1877 = vrot.lane.b32.xlu0 %v2569_v57, %s2646_s4  ;;  %v2571_v0 = vpop.eup %2570 }
0x2254   :  { %v1858_v29 = vadd.f32 1.0, %v2571_v0 }
0x2256   :  { %2572 = vrcp.f32 %v1858_v29 }
0x2260   :  { %v2573_v3 = vpop.eup %2572 }
0x22c5   :  { %v1878_v45 = vpop.permute.xlu0 %1877 }
0x22c6   :  { %v1880_v31 = vmul.f32 %v2573_v3, %v1878_v45 }
0x22c8   :  { %1881 = vst.msk [vmem:[#allocation5 + $0x30] sm:$0xff] %vm1405_vm1, %v1880_v31  ;;  %v1883_v5 = vpack.c.bf16 %v1880_v31, %v1880_v31 }
0x22c9   :  { %1882 = vst.msk [vmem:[#allocation5 + $0x8] sm:$0xff] %vm1407_vm2, %v1880_v31 }
0x22ca   :  { %2259 = vmatmul.mubr.msk.bf16.vlgmr.msra.gmra.mrb[48].mxu1 %vm320_vm0, %v1883_v5 }
0x22cf   :  { %v1968_v48 = vld [vmem:[#allocation5 + $0x30] sm:$0xff] }
0x22d0   :  { %v1963_v51 = vld [vmem:[#allocation5 + $0x8] sm:$0xff] }
0x239d   :  { %v1923_v56 = vpop.f32.mrb[48].mxu1 }
0x239e   :  { %v1924_v28 = vadd.f32 %v1923_v56, %v3238_v7  ;;  %v1925_v59 = vpop.f32.mrb[49].mxu1  ;;  %v1970_v7 = vld [vmem:[%s3421_s10] sm:$0xff] }
0x239f   :  { %v1926_v43 = vadd.f32 %v1925_v59, %v3241_v58  ;;  %v1927_v2 = vpop.f32.mrb[50].mxu1  ;;  %v1971_v58 = vld [vmem:[%s3421_s10 + $0x8] sm:$0xff] }
0x23a0   :  { %v1928_v21 = vpop.f32.mrb[51].mxu1  ;;  %v2260_v36 = vmul.f32 -1.442695, %v1924_v28  ;;  %v2323_v15 = vpack.c.bf16 %v1971_v58, %v1970_v7 }
0x23a1   :  { %2574 = vtanh.f32 %v1926_v43  ;;  %v2261_v40 = vmul.f32 -1.442695, %v1926_v43 }
0x23a2   :  { %2576 = vpow2.f32 %v2260_v36  ;;  %2324 = vmatprep.subr.bf16.mxu0 %v2323_v15 }
0x23a3   :  { %2326 = vmatpush3.bf16.msra.mxu0 %v2323_v15 }
0x23a4   :  { %2328 = vmatprep.subr.bf16.mxu0 %v2327_v44 }
0x23a7   :  { %2330 = vmatpush3.bf16.msra.mxu0 %v2327_v44 }
0x23a8   :  { %2332 = vmatprep.subr.bf16.mxu0 %v2331_v10 }
0x23ab   :  { %v2575_v26 = vpop.eup %2574  ;;  %2334 = vmatpush3.bf16.msra.mxu0 %v2331_v10 }
0x23ac   :  { %1945 = vrot.lane.b32.xlu1 %v2575_v26, %s2646_s4  ;;  %v2577_v18 = vpop.eup %2576  ;;  %2336 = vmatprep.subr.bf16.mxu0 %v2335_v46 }
0x23ad   :  { %v1936_v37 = vadd.f32 1.0, %v2577_v18 }
0x23af   :  { %2578 = vrcp.f32 %v1936_v37  ;;  %2338 = vmatpush3.bf16.msra.mxu0 %v2335_v46 }
0x23b9   :  { %v2579_v38 = vpop.eup %2578 }
0x23ba   :  { %v1943_v8 = vmul.f32 %v2579_v38, %v1874_v35 }
0x241e   :  { %v1946_v39 = vpop.permute.xlu1 %1945 }
0x241f   :  { %v1948_v13 = vmul.f32 %v2579_v38, %v1946_v39 }
0x2421   :  { %1950 = vrot.lane.b32.xlu0 %v1948_v13, %s2646_s4 }
0x2493   :  { %v1951_v27 = vpop.permute.xlu0 %1950 }
0x2494   :  { %v1953_v1 = vadd.f32 %v1951_v27, %v1943_v8 }
0x2496   :  { %2580 = vtanh.f32 %v1953_v1 }
0x2497   :  { %2582 = vpow2.f32 %v2261_v40 }
0x24a0   :  { %v2581_v12 = vpop.eup %2580 }
0x24a1   :  { %1956 = vrot.lane.b32.xlu1 %v2581_v12, %s2646_s4  ;;  %v2583_v47 = vpop.eup %2582 }
0x24a2   :  { %v1937_v25 = vadd.f32 1.0, %v2583_v47 }
0x24a4   :  { %2584 = vrcp.f32 %v1937_v25 }
0x24ae   :  { %v2585_v42 = vpop.eup %2584 }
0x2513   :  { %v1957_v49 = vpop.permute.xlu1 %1956 }
0x2514   :  { %v1959_v50 = vmul.f32 %v2585_v42, %v1957_v49 }
0x2516   :  { %1960 = vst.msk [vmem:[#allocation5 + $0x38] sm:$0xff] %vm1405_vm1, %v1959_v50 }
0x2517   :  { %1961 = vst.msk [vmem:[#allocation5] sm:$0xff] %vm1407_vm2, %v1959_v50 }
0x251d   :  { %v1969_v6 = vld [vmem:[#allocation5 + $0x38] sm:$0xff] }
0x251e   :  { %v1962_v11 = vld [vmem:[#allocation5] sm:$0xff] }
0x251f   :  { %2311 = vmatprep.mubr.msk.f32.mxu0 %vm320_vm0, %v1962_v11 }
0x2520   :  { %2312 = vmatmul.mubr.msk.f32.vlgmr.msra.gmra.mrb[44].mxu0 %vm320_vm0, %v1963_v51 }
0x2521   :  { %2314 = vmatprep.mubr.msk.f32.mxu0 %vm320_vm0, %v1964_v23 }
0x2524   :  { %2315 = vmatmul.mubr.msk.f32.gmra.mrb[46].mxu0 %vm320_vm0, %v1965_v24 }
0x2525   :  { %2317 = vmatprep.mubr.msk.f32.mxu0 %vm320_vm0, %v1966_v52 }
0x2528   :  { %2318 = vmatmul.mubr.msk.f32.gmra.mrb[48].mxu0 %vm320_vm0, %v1967_v63 }
0x2529   :  { %2320 = vmatprep.mubr.msk.f32.mxu0 %vm320_vm0, %v1968_v48 }
0x252c   :  { %2321 = vmatmul.mubr.msk.f32.gmra.mrb[50].mxu0 %vm320_vm0, %v1969_v6 }
0x25f3   :  { %v2313_v34 = vpop.f32.mrb[44].mxu0 }
0x25f4   :  { %v2081_v14 = vadd.f32 %v2313_v34, %v2262_v9  ;;  %v2075_v55 = vpop.f32.mrb[45].mxu0 }
0x25f5   :  { %v2076_v16 = vadd.f32 %v2262_v9, %v2075_v55 }
0x25f6   :  { %v2272_v33 = vmul.f32 -1.442695, %v2081_v14 }
0x25f7   :  { %v2271_v60 = vmul.f32 -1.442695, %v2076_v16  ;;  %v2316_v61 = vpop.f32.mrb[46].mxu0 }
0x25f8   :  { %2586 = vpow2.f32 %v2272_v33  ;;  %v2091_v62 = vadd.f32 %v2316_v61, %v2262_v9  ;;  %v2085_v30 = vpop.f32.mrb[47].mxu0 }
0x25f9   :  { %2588 = vpow2.f32 %v2271_v60  ;;  %v2086_v54 = vadd.f32 %v2262_v9, %v2085_v30 }
0x25fa   :  { %v2274_v22 = vmul.f32 -1.442695, %v2091_v62 }
0x25fb   :  { %v2273_v35 = vmul.f32 -1.442695, %v2086_v54  ;;  %v2319_v57 = vpop.f32.mrb[48].mxu0 }
0x25fc   :  { %2590 = vpow2.f32 %v2274_v22  ;;  %v2101_v32 = vadd.f32 %v2319_v57, %v2262_v9  ;;  %v2095_v0 = vpop.f32.mrb[49].mxu0 }
0x25fd   :  { %2592 = vpow2.f32 %v2273_v35  ;;  %v2096_v29 = vadd.f32 %v2262_v9, %v2095_v0 }
0x25fe   :  { %v2276_v3 = vmul.f32 -1.442695, %v2101_v32 }
0x25ff   :  { %v2275_v45 = vmul.f32 -1.442695, %v2096_v29  ;;  %v2322_v31 = vpop.f32.mrb[50].mxu0 }
0x2600   :  { %2594 = vpow2.f32 %v2276_v3  ;;  %v2111_v5 = vadd.f32 %v2322_v31, %v2262_v9  ;;  %v2105_v56 = vpop.f32.mrb[51].mxu0 }
0x2601   :  { %2596 = vpow2.f32 %v2275_v45  ;;  %v2106_v28 = vadd.f32 %v2262_v9, %v2105_v56 }
0x2602   :  { %v2587_v59 = vpop.eup %2586  ;;  %v2278_v43 = vmul.f32 -1.442695, %v2111_v5 }
0x2603   :  { %v2589_v2 = vpop.eup %2588  ;;  %v2139_v21 = vadd.f32 1.0, %v2587_v59  ;;  %v2277_v26 = vmul.f32 -1.442695, %v2106_v28 }
0x2604   :  { %v2138_v36 = vadd.f32 1.0, %v2589_v2  ;;  %2598 = vpow2.f32 %v2278_v43 }
0x2605   :  { %2600 = vrcp.f32 %v2139_v21 }
0x2606   :  { %v2591_v18 = vpop.eup %2590  ;;  %2602 = vrcp.f32 %v2138_v36 }
0x2607   :  { %v2593_v37 = vpop.eup %2592  ;;  %v2141_v38 = vadd.f32 1.0, %v2591_v18  ;;  %2604 = vpow2.f32 %v2277_v26 }
0x2608   :  { %v2140_v39 = vadd.f32 1.0, %v2593_v37 }
0x2609   :  { %2606 = vrcp.f32 %v2141_v38 }
0x260a   :  { %v2595_v13 = vpop.eup %2594  ;;  %2608 = vrcp.f32 %v2140_v39 }
0x260b   :  { %v2597_v7 = vpop.eup %2596  ;;  %v2143_v58 = vadd.f32 1.0, %v2595_v13 }
0x260c   :  { %v2142_v41 = vadd.f32 1.0, %v2597_v7 }
0x260d   :  { %2610 = vrcp.f32 %v2143_v58 }
0x260e   :  { %v2599_v15 = vpop.eup %2598  ;;  %2612 = vrcp.f32 %v2142_v41 }
0x260f   :  { %v2601_v17 = vpop.eup %2600  ;;  %v2145_v44 = vadd.f32 1.0, %v2599_v15 }
0x2610   :  { %v2603_v8 = vpop.eup %2602  ;;  %2164 = vst.msk [vmem:[%s3423_s12 + $0x8] sm:$0xff] %vm2162_vm3, %v2601_v17 }
0x2611   :  { %v2605_v27 = vpop.eup %2604  ;;  %2163 = vst.msk [vmem:[%s3423_s12] sm:$0xff] %vm2162_vm3, %v2603_v8  ;;  %2614 = vrcp.f32 %v2145_v44 }
0x2612   :  { %v2144_v1 = vadd.f32 1.0, %v2605_v27 }
0x2613   :  { %v2607_v20 = vpop.eup %2606 }
0x2614   :  { %v2609_v19 = vpop.eup %2608  ;;  %2166 = vst.msk [vmem:[%s3423_s12 + $0x18] sm:$0xff] %vm2162_vm3, %v2607_v20  ;;  %2616 = vrcp.f32 %v2144_v1 }
0x2615   :  { %2165 = vst.msk [vmem:[%s3423_s12 + $0x10] sm:$0xff] %vm2162_vm3, %v2609_v19 }
0x2617   :  { %v2611_v10 = vpop.eup %2610 }
0x2618   :  { %v2613_v4 = vpop.eup %2612  ;;  %2168 = vst.msk [vmem:[%s3423_s12 + $0x28] sm:$0xff] %vm2162_vm3, %v2611_v10 }
0x2619   :  { %2167 = vst.msk [vmem:[%s3423_s12 + $0x20] sm:$0xff] %vm2162_vm3, %v2613_v4 }
0x261b   :  { %v2615_v53 = vpop.eup %2614 }
0x261c   :  { %2170 = vst.msk [vmem:[%s3423_s12 + $0x38] sm:$0xff] %vm2162_vm3, %v2615_v53 }
0x261e   :  { %v2617_v46 = vpop.eup %2616 }
0x261f   :  { %2169 = vst.msk [vmem:[%s3423_s12 + $0x30] sm:$0xff] %vm2162_vm3, %v2617_v46 }
0x2620   :  { %2175 = vsyncpa [#allocation8], 1 }

</bundles_post_ra>
